<compile_context>
chip_gen: v7x
topology: tpu7x:2x2x1
jax: 0.10.0
libtpu: 0.0.40
codegen_flags: <defaults>
</compile_context>

<pallas_src>
import jax
import jax.numpy as jnp
from jax import lax
from jax.experimental import pallas as pl
from jax.experimental.pallas import tpu as pltpu


# ----------------------------------------------------------------------------
# Pallas kernel: one ResidualAttentionBlock, one (batch, query-tile) program.
# ----------------------------------------------------------------------------
def _make_block_kernel(num_heads: int, head_dim: int, tile_l: int):
    scale = head_dim ** (-0.5)
    embed = num_heads * head_dim

    def kernel(x_ref,
               ln1g_ref, ln1b_ref,
               wq_ref, bq_ref, wkv_ref, bkv_ref, wo_ref, bo_ref,
               ln2g_ref, ln2b_ref,
               wfc_ref, bfc_ref, wpj_ref, bpj_ref,
               o_ref, ctx_ref):
        row0 = pl.multiple_of(pl.program_id(1) * tile_l, tile_l)

        x_full = x_ref[...].astype(jnp.float32)                      # [L, E]
        x_tile = x_ref[pl.ds(row0, tile_l), :].astype(jnp.float32)   # [TL, E]

        def layernorm(v, g_ref, b_ref):                # f32, single-pass var
            mu = jnp.mean(v, axis=-1, keepdims=True)
            var = jnp.mean(v * v, axis=-1, keepdims=True) - mu * mu
            return (v - mu) * lax.rsqrt(var + 1e-5) * g_ref[...] + b_ref[...]

        # ---- attention branch --------------------------------------------
        xl_full = layernorm(x_full, ln1g_ref, ln1b_ref).astype(jnp.bfloat16)
        xl_tile = layernorm(x_tile, ln1g_ref, ln1b_ref).astype(jnp.bfloat16)

        # Q only for this query tile; fused K/V projection over full sequence.
        # TODO(synk): K/V projections are recomputed per L-tile; at >1 tiles a
        # two-stage (QKV-precompute) pipeline would remove this redundancy.
        q = jnp.dot(xl_tile, wq_ref[...],
                    preferred_element_type=jnp.float32) + bq_ref[...]
        q = (q * scale).astype(jnp.bfloat16)                         # [TL, E]
        kv = jnp.dot(xl_full, wkv_ref[...],
                     preferred_element_type=jnp.float32) + bkv_ref[...]
        kv = kv.astype(jnp.bfloat16)                                 # [L, 2E]
        k = kv[:, :embed]
        v = kv[:, embed:]

        # TODO(synk): batch heads into one einsum ('hld,hmd->hlm') for better
        # MXU fill on v5e once the E -> (H, Dh) relayout is verified on Mosaic.
        for h in range(num_heads):                                   # static
            sl = slice(h * head_dim, (h + 1) * head_dim)
            qh, kh, vh = q[:, sl], k[:, sl], v[:, sl]                # [*, Dh]
            s = lax.dot_general(qh, kh, (((1,), (1,)), ((), ())),
                                preferred_element_type=jnp.float32)  # [TL, L]
            s = s - jnp.max(s, axis=-1, keepdims=True)
            p = jnp.exp(s)
            p = p * pl.reciprocal(jnp.sum(p, axis=-1, keepdims=True),
                                  approx=True)
            ctx_ref[:, sl] = jnp.dot(
                p.astype(jnp.bfloat16), vh,
                preferred_element_type=jnp.float32).astype(jnp.bfloat16)

        attn_out = jnp.dot(ctx_ref[...], wo_ref[...],
                           preferred_element_type=jnp.float32) + bo_ref[...]
        x1 = x_tile + attn_out

        # ---- MLP branch ----------------------------------------------------
        x2 = layernorm(x1, ln2g_ref, ln2b_ref).astype(jnp.bfloat16)
        hdn = jnp.dot(x2, wfc_ref[...],
                      preferred_element_type=jnp.float32) + bfc_ref[...]
        hdn = (hdn * jax.nn.sigmoid(1.702 * hdn)).astype(jnp.bfloat16)
        y = jnp.dot(hdn, wpj_ref[...],
                    preferred_element_type=jnp.float32) + bpj_ref[...]

        o_ref[...] = (x1 + y).astype(o_ref.dtype)

    return kernel


def residual_block(x_nle, params, num_heads, tile_l):
    """One ResidualAttentionBlock. x_nle: [N, L, E]."""
    N, L, E = x_nle.shape
    head_dim = E // num_heads
    weights = [
        params["ln1_g"], params["ln1_b"],
        params["wq"], params["bq"], params["wkv"], params["bkv"],
        params["wo"], params["bo"],
        params["ln2_g"], params["ln2_b"],
        params["w_fc"], params["b_fc"], params["w_proj"], params["b_proj"],
    ]
    # Whole-array, single-copy VMEM residency (no pipelining / double buffers).
    vmem_full = pl.BlockSpec(memory_space=pltpu.MemorySpace.VMEM)
    kernel = _make_block_kernel(num_heads, head_dim, tile_l)
    return pl.pallas_call(
        kernel,
        out_shape=jax.ShapeDtypeStruct((N, L, E), x_nle.dtype),
        grid=(N, L // tile_l),
        in_specs=[pl.BlockSpec((None, L, E), lambda b, i: (b, 0, 0))]
                 + [vmem_full] * len(weights),
        out_specs=pl.BlockSpec((None, tile_l, E), lambda b, i: (b, i, 0)),
        scratch_shapes=[pltpu.VMEM((tile_l, E), jnp.bfloat16)],
        compiler_params=pltpu.CompilerParams(
            dimension_semantics=("parallel", "parallel"),
            vmem_limit_bytes=64 * 1024 * 1024),
    )(x_nle, *weights)


def _pick_tile_l(L):
    for t in (128, 64, 32, 16, 8):
        if L % t == 0:
            return t
    return L


def transformer_forward(x_lne, layer_params, num_heads):
    """Matches Transformer.forward: input/output shape [L, N, E]."""
    x = jnp.transpose(x_lne, (1, 0, 2))          # -> [N, L, E]
    tile_l = _pick_tile_l(x.shape[1])
    for p in layer_params:
        x = residual_block(x, p, num_heads, tile_l)
    return jnp.transpose(x, (1, 0, 2))           # -> [L, N, E]


# ----------------------------------------------------------------------------
# Deterministic init (xavier-uniform weights, zero biases, LN gamma=1/beta=0,
# consistent with MultiheadAttention._reset_parameters). Weights stored as
# [in, out] bf16 so the kernel computes x @ W on the MXU fast path.
# ----------------------------------------------------------------------------
def _xavier(key, fan_in, fan_out):
    bound = (6.0 / (fan_in + fan_out)) ** 0.5
    return jax.random.uniform(key, (fan_in, fan_out), jnp.float32, -bound, bound)


def init_layer_params(key, width):
    ks = jax.random.split(key, 6)
    E, H4 = width, 4 * width
    wk = _xavier(ks[1], E, E)
    wv = _xavier(ks[2], E, E)
    return {
        "ln1_g": jnp.ones((1, E), jnp.float32),
        "ln1_b": jnp.zeros((1, E), jnp.float32),
        "wq": _xavier(ks[0], E, E).astype(jnp.bfloat16),
        "bq": jnp.zeros((1, E), jnp.float32),
        "wkv": jnp.concatenate([wk, wv], axis=1).astype(jnp.bfloat16),
        "bkv": jnp.zeros((1, 2 * E), jnp.float32),
        "wo": _xavier(ks[3], E, E).astype(jnp.bfloat16),
        "bo": jnp.zeros((1, E), jnp.float32),
        "ln2_g": jnp.ones((1, E), jnp.float32),
        "ln2_b": jnp.zeros((1, E), jnp.float32),
        "w_fc": _xavier(ks[4], E, H4).astype(jnp.bfloat16),
        "b_fc": jnp.zeros((1, H4), jnp.float32),
        "w_proj": _xavier(ks[5], H4, E).astype(jnp.bfloat16),
        "b_proj": jnp.zeros((1, E), jnp.float32),
    }


# ----------------------------------------------------------------------------
# Pure-JAX reference with the same bf16 matmul / f32 accumulate choices.
# ----------------------------------------------------------------------------
def _ref_layernorm(x, g, b):
    mu = jnp.mean(x, axis=-1, keepdims=True)
    var = jnp.mean((x - mu) ** 2, axis=-1, keepdims=True)
    return (x - mu) / jnp.sqrt(var + 1e-5) * g + b


def ref_transformer(x_lne, layer_params, num_heads):
    x = jnp.transpose(x_lne, (1, 0, 2)).astype(jnp.float32)   # [N, L, E]
    N, L, E = x.shape
    Dh = E // num_heads
    for p in layer_params:
        xl = _ref_layernorm(x, p["ln1_g"], p["ln1_b"]).astype(jnp.bfloat16)
        q = jnp.einsum("nle,ef->nlf", xl, p["wq"],
                       preferred_element_type=jnp.float32) + p["bq"]
        q = (q * Dh ** -0.5).astype(jnp.bfloat16)
        kv = jnp.einsum("nle,ef->nlf", xl, p["wkv"],
                        preferred_element_type=jnp.float32) + p["bkv"]
        kv = kv.astype(jnp.bfloat16)
        k, v = kv[..., :E], kv[..., E:]
        qh = q.reshape(N, L, num_heads, Dh)
        kh = k.reshape(N, L, num_heads, Dh)
        vh = v.reshape(N, L, num_heads, Dh)
        s = jnp.einsum("nlhd,nmhd->nhlm", qh, kh,
                       preferred_element_type=jnp.float32)
        pw = jax.nn.softmax(s, axis=-1).astype(jnp.bfloat16)
        ctx = jnp.einsum("nhlm,nmhd->nlhd", pw, vh,
                         preferred_element_type=jnp.float32)
        ctx = ctx.reshape(N, L, E).astype(jnp.bfloat16)
        x = x + (jnp.einsum("nle,ef->nlf", ctx, p["wo"],
                            preferred_element_type=jnp.float32) + p["bo"])
        x2 = _ref_layernorm(x, p["ln2_g"], p["ln2_b"]).astype(jnp.bfloat16)
        h = jnp.einsum("nle,ef->nlf", x2, p["w_fc"],
                       preferred_element_type=jnp.float32) + p["b_fc"]
        h = (h * jax.nn.sigmoid(1.702 * h)).astype(jnp.bfloat16)
        x = x + (jnp.einsum("nlh,he->nle", h, p["w_proj"],
                            preferred_element_type=jnp.float32) + p["b_proj"])
    return jnp.transpose(x, (1, 0, 2))


# ----------------------------------------------------------------------------
if __name__ == "__main__":
    L, N, WIDTH, HEADS, LAYERS = 8, 2, 32, 4, 2

    key = jax.random.PRNGKey(0)
    kx, kp = jax.random.split(key)
    x = jax.random.normal(kx, (L, N, WIDTH), jnp.float32)   # [seq, batch, embed]

    layer_keys = jax.random.split(kp, LAYERS)
    layer_params = [init_layer_params(k, WIDTH) for k in layer_keys]

    out = transformer_forward(x, layer_params, HEADS)
    out = jax.block_until_ready(out)

    ref = ref_transformer(x, layer_params, HEADS)
    assert out.shape == (L, N, WIDTH)
    assert jnp.allclose(out, ref, atol=3e-2, rtol=3e-2), "mismatch vs reference"

    # TODO(synk): attn_probs forward/backward hooks and attention dropout are
    # training/introspection features with no effect on this inference pass.
    print("KERNEL_OK")
</pallas_src>

<mosaic_0001>
module attributes {stable_mosaic.version = 11 : i64} {
  func.func @kernel(%arg0: i32, %arg1: i32, %arg2: memref<1x8x32xf32, #tpu.memory_space<vmem>>, %arg3: memref<1x32xf32, #tpu.memory_space<vmem>>, %arg4: memref<1x32xf32, #tpu.memory_space<vmem>>, %arg5: memref<32x32xbf16, #tpu.memory_space<vmem>>, %arg6: memref<1x32xf32, #tpu.memory_space<vmem>>, %arg7: memref<32x64xbf16, #tpu.memory_space<vmem>>, %arg8: memref<1x64xf32, #tpu.memory_space<vmem>>, %arg9: memref<32x32xbf16, #tpu.memory_space<vmem>>, %arg10: memref<1x32xf32, #tpu.memory_space<vmem>>, %arg11: memref<1x32xf32, #tpu.memory_space<vmem>>, %arg12: memref<1x32xf32, #tpu.memory_space<vmem>>, %arg13: memref<32x128xbf16, #tpu.memory_space<vmem>>, %arg14: memref<1x128xf32, #tpu.memory_space<vmem>>, %arg15: memref<128x32xbf16, #tpu.memory_space<vmem>>, %arg16: memref<1x32xf32, #tpu.memory_space<vmem>>, %arg17: memref<1x8x32xf32, #tpu.memory_space<vmem>>, %arg18: memref<8x32xbf16, #tpu.memory_space<vmem>>) attributes {dimension_semantics = [#tpu.dimension_semantics<parallel>, #tpu.dimension_semantics<parallel>], iteration_bounds = array<i64: 2, 1>, scalar_prefetch = 0 : i64, scratch_operands = 1 : i64, tpu.core_type = #tpu.core_type<tc>, window_params = [{transform_indices = @transform_0, window_bounds = array<i64: 1, 8, 32>}, {pipeline_mode = #tpu.pipeline_mode<synchronous>, transform_indices = @transform_1, window_bounds = array<i64: 1, 32>}, {pipeline_mode = #tpu.pipeline_mode<synchronous>, transform_indices = @transform_2, window_bounds = array<i64: 1, 32>}, {pipeline_mode = #tpu.pipeline_mode<synchronous>, transform_indices = @transform_3, window_bounds = array<i64: 32, 32>}, {pipeline_mode = #tpu.pipeline_mode<synchronous>, transform_indices = @transform_4, window_bounds = array<i64: 1, 32>}, {pipeline_mode = #tpu.pipeline_mode<synchronous>, transform_indices = @transform_5, window_bounds = array<i64: 32, 64>}, {pipeline_mode = #tpu.pipeline_mode<synchronous>, transform_indices = @transform_6, window_bounds = array<i64: 1, 64>}, {pipeline_mode = #tpu.pipeline_mode<synchronous>, transform_indices = @transform_7, window_bounds = array<i64: 32, 32>}, {pipeline_mode = #tpu.pipeline_mode<synchronous>, transform_indices = @transform_8, window_bounds = array<i64: 1, 32>}, {pipeline_mode = #tpu.pipeline_mode<synchronous>, transform_indices = @transform_9, window_bounds = array<i64: 1, 32>}, {pipeline_mode = #tpu.pipeline_mode<synchronous>, transform_indices = @transform_10, window_bounds = array<i64: 1, 32>}, {pipeline_mode = #tpu.pipeline_mode<synchronous>, transform_indices = @transform_11, window_bounds = array<i64: 32, 128>}, {pipeline_mode = #tpu.pipeline_mode<synchronous>, transform_indices = @transform_12, window_bounds = array<i64: 1, 128>}, {pipeline_mode = #tpu.pipeline_mode<synchronous>, transform_indices = @transform_13, window_bounds = array<i64: 128, 32>}, {pipeline_mode = #tpu.pipeline_mode<synchronous>, transform_indices = @transform_14, window_bounds = array<i64: 1, 32>}, {transform_indices = @transform_15, window_bounds = array<i64: 1, 8, 32>}]} {
    %c8_i32 = arith.constant 8 : i32
    %0 = arith.muli %arg1, %c8_i32 : i32
    %1 = tpu.assume_multiple %0, 8 : i32
    %c0 = arith.constant 0 : index
    %c0_0 = arith.constant 0 : index
    %c0_1 = arith.constant 0 : index
    %2 = vector.load %arg2[%c0, %c0_0, %c0_1] : memref<1x8x32xf32, #tpu.memory_space<vmem>>, vector<1x8x32xf32>
    %3 = vector.shape_cast %2 : vector<1x8x32xf32> to vector<8x32xf32>
    %c0_2 = arith.constant 0 : index
    %4 = arith.index_cast %1 : i32 to index
    %c0_3 = arith.constant 0 : index
    %5 = vector.load %arg2[%c0_2, %4, %c0_3] : memref<1x8x32xf32, #tpu.memory_space<vmem>>, vector<1x8x32xf32>
    %6 = vector.shape_cast %5 : vector<1x8x32xf32> to vector<8x32xf32>
    %cst = arith.constant dense<0.000000e+00> : vector<8xf32>
    %7 = vector.multi_reduction <add>, %3, %cst [1] : vector<8x32xf32> to vector<8xf32>
    %8 = vector.shape_cast %7 : vector<8xf32> to vector<8x1xf32>
    %cst_4 = arith.constant 3.200000e+01 : f32
    %9 = vector.broadcast %cst_4 : f32 to vector<8x1xf32>
    %10 = arith.divf %8, %9 : vector<8x1xf32>
    %11 = arith.mulf %3, %3 : vector<8x32xf32>
    %cst_5 = arith.constant dense<0.000000e+00> : vector<8xf32>
    %12 = vector.multi_reduction <add>, %11, %cst_5 [1] : vector<8x32xf32> to vector<8xf32>
    %13 = vector.shape_cast %12 : vector<8xf32> to vector<8x1xf32>
    %cst_6 = arith.constant 3.200000e+01 : f32
    %14 = vector.broadcast %cst_6 : f32 to vector<8x1xf32>
    %15 = arith.divf %13, %14 : vector<8x1xf32>
    %16 = arith.mulf %10, %10 : vector<8x1xf32>
    %17 = arith.subf %15, %16 : vector<8x1xf32>
    %18 = vector.broadcast %10 : vector<8x1xf32> to vector<8x32xf32>
    %19 = arith.subf %3, %18 : vector<8x32xf32>
    %cst_7 = arith.constant 9.99999974E-6 : f32
    %20 = vector.broadcast %cst_7 : f32 to vector<8x1xf32>
    %21 = arith.addf %17, %20 : vector<8x1xf32>
    %22 = math.rsqrt %21 : vector<8x1xf32>
    %23 = vector.broadcast %22 : vector<8x1xf32> to vector<8x32xf32>
    %24 = arith.mulf %19, %23 : vector<8x32xf32>
    %c0_8 = arith.constant 0 : index
    %c0_9 = arith.constant 0 : index
    %25 = vector.load %arg3[%c0_8, %c0_9] : memref<1x32xf32, #tpu.memory_space<vmem>>, vector<1x32xf32>
    %26 = vector.broadcast %25 : vector<1x32xf32> to vector<8x32xf32>
    %27 = arith.mulf %24, %26 : vector<8x32xf32>
    %c0_10 = arith.constant 0 : index
    %c0_11 = arith.constant 0 : index
    %28 = vector.load %arg4[%c0_10, %c0_11] : memref<1x32xf32, #tpu.memory_space<vmem>>, vector<1x32xf32>
    %29 = vector.broadcast %28 : vector<1x32xf32> to vector<8x32xf32>
    %30 = arith.addf %27, %29 : vector<8x32xf32>
    %31 = arith.truncf %30 : vector<8x32xf32> to vector<8x32xbf16>
    %cst_12 = arith.constant dense<0.000000e+00> : vector<8xf32>
    %32 = vector.multi_reduction <add>, %6, %cst_12 [1] : vector<8x32xf32> to vector<8xf32>
    %33 = vector.shape_cast %32 : vector<8xf32> to vector<8x1xf32>
    %cst_13 = arith.constant 3.200000e+01 : f32
    %34 = vector.broadcast %cst_13 : f32 to vector<8x1xf32>
    %35 = arith.divf %33, %34 : vector<8x1xf32>
    %36 = arith.mulf %6, %6 : vector<8x32xf32>
    %cst_14 = arith.constant dense<0.000000e+00> : vector<8xf32>
    %37 = vector.multi_reduction <add>, %36, %cst_14 [1] : vector<8x32xf32> to vector<8xf32>
    %38 = vector.shape_cast %37 : vector<8xf32> to vector<8x1xf32>
    %cst_15 = arith.constant 3.200000e+01 : f32
    %39 = vector.broadcast %cst_15 : f32 to vector<8x1xf32>
    %40 = arith.divf %38, %39 : vector<8x1xf32>
    %41 = arith.mulf %35, %35 : vector<8x1xf32>
    %42 = arith.subf %40, %41 : vector<8x1xf32>
    %43 = vector.broadcast %35 : vector<8x1xf32> to vector<8x32xf32>
    %44 = arith.subf %6, %43 : vector<8x32xf32>
    %cst_16 = arith.constant 9.99999974E-6 : f32
    %45 = vector.broadcast %cst_16 : f32 to vector<8x1xf32>
    %46 = arith.addf %42, %45 : vector<8x1xf32>
    %47 = math.rsqrt %46 : vector<8x1xf32>
    %48 = vector.broadcast %47 : vector<8x1xf32> to vector<8x32xf32>
    %49 = arith.mulf %44, %48 : vector<8x32xf32>
    %c0_17 = arith.constant 0 : index
    %c0_18 = arith.constant 0 : index
    %50 = vector.load %arg3[%c0_17, %c0_18] : memref<1x32xf32, #tpu.memory_space<vmem>>, vector<1x32xf32>
    %51 = vector.broadcast %50 : vector<1x32xf32> to vector<8x32xf32>
    %52 = arith.mulf %49, %51 : vector<8x32xf32>
    %c0_19 = arith.constant 0 : index
    %c0_20 = arith.constant 0 : index
    %53 = vector.load %arg4[%c0_19, %c0_20] : memref<1x32xf32, #tpu.memory_space<vmem>>, vector<1x32xf32>
    %54 = vector.broadcast %53 : vector<1x32xf32> to vector<8x32xf32>
    %55 = arith.addf %52, %54 : vector<8x32xf32>
    %56 = arith.truncf %55 : vector<8x32xf32> to vector<8x32xbf16>
    %c0_21 = arith.constant 0 : index
    %c0_22 = arith.constant 0 : index
    %57 = vector.load %arg5[%c0_21, %c0_22] : memref<32x32xbf16, #tpu.memory_space<vmem>>, vector<32x32xbf16>
    %cst_23 = arith.constant dense<0.000000e+00> : vector<8x32xf32>
    %58 = tpu.matmul %56, %57, %cst_23 {dimension_numbers = #tpu.dot_dimension_numbers<[1], [0], [0], [1], [0, 0, 1, 1], [], []>} : vector<8x32xbf16>, vector<32x32xbf16>, vector<8x32xf32> -> vector<8x32xf32>
    %c0_24 = arith.constant 0 : index
    %c0_25 = arith.constant 0 : index
    %59 = vector.load %arg6[%c0_24, %c0_25] : memref<1x32xf32, #tpu.memory_space<vmem>>, vector<1x32xf32>
    %60 = vector.broadcast %59 : vector<1x32xf32> to vector<8x32xf32>
    %61 = arith.addf %58, %60 : vector<8x32xf32>
    %cst_26 = arith.constant 0.353553385 : f32
    %62 = vector.broadcast %cst_26 : f32 to vector<8x32xf32>
    %63 = arith.mulf %61, %62 : vector<8x32xf32>
    %64 = arith.truncf %63 : vector<8x32xf32> to vector<8x32xbf16>
    %c0_27 = arith.constant 0 : index
    %c0_28 = arith.constant 0 : index
    %65 = vector.load %arg7[%c0_27, %c0_28] : memref<32x64xbf16, #tpu.memory_space<vmem>>, vector<32x64xbf16>
    %cst_29 = arith.constant dense<0.000000e+00> : vector<8x64xf32>
    %66 = tpu.matmul %31, %65, %cst_29 {dimension_numbers = #tpu.dot_dimension_numbers<[1], [0], [0], [1], [0, 0, 1, 1], [], []>} : vector<8x32xbf16>, vector<32x64xbf16>, vector<8x64xf32> -> vector<8x64xf32>
    %c0_30 = arith.constant 0 : index
    %c0_31 = arith.constant 0 : index
    %67 = vector.load %arg8[%c0_30, %c0_31] : memref<1x64xf32, #tpu.memory_space<vmem>>, vector<1x64xf32>
    %68 = vector.broadcast %67 : vector<1x64xf32> to vector<8x64xf32>
    %69 = arith.addf %66, %68 : vector<8x64xf32>
    %70 = arith.truncf %69 : vector<8x64xf32> to vector<8x64xbf16>
    %71 = vector.extract_strided_slice %70 {offsets = [0, 0], sizes = [8, 32], strides = [1, 1]} : vector<8x64xbf16> to vector<8x32xbf16>
    %72 = vector.extract_strided_slice %70 {offsets = [0, 32], sizes = [8, 32], strides = [1, 1]} : vector<8x64xbf16> to vector<8x32xbf16>
    %73 = vector.extract_strided_slice %64 {offsets = [0, 0], sizes = [8, 8], strides = [1, 1]} : vector<8x32xbf16> to vector<8x8xbf16>
    %74 = vector.extract_strided_slice %71 {offsets = [0, 0], sizes = [8, 8], strides = [1, 1]} : vector<8x32xbf16> to vector<8x8xbf16>
    %75 = vector.extract_strided_slice %72 {offsets = [0, 0], sizes = [8, 8], strides = [1, 1]} : vector<8x32xbf16> to vector<8x8xbf16>
    %cst_32 = arith.constant dense<0.000000e+00> : vector<8x8xf32>
    %76 = tpu.matmul %73, %74, %cst_32 {dimension_numbers = #tpu.dot_dimension_numbers<[1], [1], [0], [0], [0, 0, 1, 0], [], []>} : vector<8x8xbf16>, vector<8x8xbf16>, vector<8x8xf32> -> vector<8x8xf32>
    %cst_33 = arith.constant dense<0xFF800000> : vector<8xf32>
    %77 = vector.multi_reduction <maximumf>, %76, %cst_33 [1] : vector<8x8xf32> to vector<8xf32>
    %78 = vector.shape_cast %77 : vector<8xf32> to vector<8x1xf32>
    %79 = vector.broadcast %78 : vector<8x1xf32> to vector<8x8xf32>
    %80 = arith.subf %76, %79 : vector<8x8xf32>
    %81 = math.exp %80 : vector<8x8xf32>
    %cst_34 = arith.constant dense<0.000000e+00> : vector<8xf32>
    %82 = vector.multi_reduction <add>, %81, %cst_34 [1] : vector<8x8xf32> to vector<8xf32>
    %83 = vector.shape_cast %82 : vector<8xf32> to vector<8x1xf32>
    %84 = tpu.reciprocal %83 {approx = true} : vector<8x1xf32> -> vector<8x1xf32>
    %85 = vector.broadcast %84 : vector<8x1xf32> to vector<8x8xf32>
    %86 = arith.mulf %81, %85 : vector<8x8xf32>
    %87 = arith.truncf %86 : vector<8x8xf32> to vector<8x8xbf16>
    %cst_35 = arith.constant dense<0.000000e+00> : vector<8x8xf32>
    %88 = tpu.matmul %87, %75, %cst_35 {dimension_numbers = #tpu.dot_dimension_numbers<[1], [0], [0], [1], [0, 0, 1, 1], [], []>} : vector<8x8xbf16>, vector<8x8xbf16>, vector<8x8xf32> -> vector<8x8xf32>
    %89 = arith.truncf %88 : vector<8x8xf32> to vector<8x8xbf16>
    %c0_36 = arith.constant 0 : index
    %c0_37 = arith.constant 0 : index
    %90 = vector.load %arg18[%c0_36, %c0_37] : memref<8x32xbf16, #tpu.memory_space<vmem>>, vector<8x8xbf16>
    tpu.vector_store %arg18[%c0_36, %c0_37], %89 {strides = array<i32>} : memref<8x32xbf16, #tpu.memory_space<vmem>>, vector<8x8xbf16>,
    %91 = vector.extract_strided_slice %64 {offsets = [0, 8], sizes = [8, 8], strides = [1, 1]} : vector<8x32xbf16> to vector<8x8xbf16>
    %92 = vector.extract_strided_slice %71 {offsets = [0, 8], sizes = [8, 8], strides = [1, 1]} : vector<8x32xbf16> to vector<8x8xbf16>
    %93 = vector.extract_strided_slice %72 {offsets = [0, 8], sizes = [8, 8], strides = [1, 1]} : vector<8x32xbf16> to vector<8x8xbf16>
    %cst_38 = arith.constant dense<0.000000e+00> : vector<8x8xf32>
    %94 = tpu.matmul %91, %92, %cst_38 {dimension_numbers = #tpu.dot_dimension_numbers<[1], [1], [0], [0], [0, 0, 1, 0], [], []>} : vector<8x8xbf16>, vector<8x8xbf16>, vector<8x8xf32> -> vector<8x8xf32>
    %cst_39 = arith.constant dense<0xFF800000> : vector<8xf32>
    %95 = vector.multi_reduction <maximumf>, %94, %cst_39 [1] : vector<8x8xf32> to vector<8xf32>
    %96 = vector.shape_cast %95 : vector<8xf32> to vector<8x1xf32>
    %97 = vector.broadcast %96 : vector<8x1xf32> to vector<8x8xf32>
    %98 = arith.subf %94, %97 : vector<8x8xf32>
    %99 = math.exp %98 : vector<8x8xf32>
    %cst_40 = arith.constant dense<0.000000e+00> : vector<8xf32>
    %100 = vector.multi_reduction <add>, %99, %cst_40 [1] : vector<8x8xf32> to vector<8xf32>
    %101 = vector.shape_cast %100 : vector<8xf32> to vector<8x1xf32>
    %102 = tpu.reciprocal %101 {approx = true} : vector<8x1xf32> -> vector<8x1xf32>
    %103 = vector.broadcast %102 : vector<8x1xf32> to vector<8x8xf32>
    %104 = arith.mulf %99, %103 : vector<8x8xf32>
    %105 = arith.truncf %104 : vector<8x8xf32> to vector<8x8xbf16>
    %cst_41 = arith.constant dense<0.000000e+00> : vector<8x8xf32>
    %106 = tpu.matmul %105, %93, %cst_41 {dimension_numbers = #tpu.dot_dimension_numbers<[1], [0], [0], [1], [0, 0, 1, 1], [], []>} : vector<8x8xbf16>, vector<8x8xbf16>, vector<8x8xf32> -> vector<8x8xf32>
    %107 = arith.truncf %106 : vector<8x8xf32> to vector<8x8xbf16>
    %c0_42 = arith.constant 0 : index
    %c8 = arith.constant 8 : index
    %108 = vector.load %arg18[%c0_42, %c8] : memref<8x32xbf16, #tpu.memory_space<vmem>>, vector<8x8xbf16>
    tpu.vector_store %arg18[%c0_42, %c8], %107 {strides = array<i32>} : memref<8x32xbf16, #tpu.memory_space<vmem>>, vector<8x8xbf16>,
    %109 = vector.extract_strided_slice %64 {offsets = [0, 16], sizes = [8, 8], strides = [1, 1]} : vector<8x32xbf16> to vector<8x8xbf16>
    %110 = vector.extract_strided_slice %71 {offsets = [0, 16], sizes = [8, 8], strides = [1, 1]} : vector<8x32xbf16> to vector<8x8xbf16>
    %111 = vector.extract_strided_slice %72 {offsets = [0, 16], sizes = [8, 8], strides = [1, 1]} : vector<8x32xbf16> to vector<8x8xbf16>
    %cst_43 = arith.constant dense<0.000000e+00> : vector<8x8xf32>
    %112 = tpu.matmul %109, %110, %cst_43 {dimension_numbers = #tpu.dot_dimension_numbers<[1], [1], [0], [0], [0, 0, 1, 0], [], []>} : vector<8x8xbf16>, vector<8x8xbf16>, vector<8x8xf32> -> vector<8x8xf32>
    %cst_44 = arith.constant dense<0xFF800000> : vector<8xf32>
    %113 = vector.multi_reduction <maximumf>, %112, %cst_44 [1] : vector<8x8xf32> to vector<8xf32>
    %114 = vector.shape_cast %113 : vector<8xf32> to vector<8x1xf32>
    %115 = vector.broadcast %114 : vector<8x1xf32> to vector<8x8xf32>
    %116 = arith.subf %112, %115 : vector<8x8xf32>
    %117 = math.exp %116 : vector<8x8xf32>
    %cst_45 = arith.constant dense<0.000000e+00> : vector<8xf32>
    %118 = vector.multi_reduction <add>, %117, %cst_45 [1] : vector<8x8xf32> to vector<8xf32>
    %119 = vector.shape_cast %118 : vector<8xf32> to vector<8x1xf32>
    %120 = tpu.reciprocal %119 {approx = true} : vector<8x1xf32> -> vector<8x1xf32>
    %121 = vector.broadcast %120 : vector<8x1xf32> to vector<8x8xf32>
    %122 = arith.mulf %117, %121 : vector<8x8xf32>
    %123 = arith.truncf %122 : vector<8x8xf32> to vector<8x8xbf16>
    %cst_46 = arith.constant dense<0.000000e+00> : vector<8x8xf32>
    %124 = tpu.matmul %123, %111, %cst_46 {dimension_numbers = #tpu.dot_dimension_numbers<[1], [0], [0], [1], [0, 0, 1, 1], [], []>} : vector<8x8xbf16>, vector<8x8xbf16>, vector<8x8xf32> -> vector<8x8xf32>
    %125 = arith.truncf %124 : vector<8x8xf32> to vector<8x8xbf16>
    %c0_47 = arith.constant 0 : index
    %c16 = arith.constant 16 : index
    %126 = vector.load %arg18[%c0_47, %c16] : memref<8x32xbf16, #tpu.memory_space<vmem>>, vector<8x8xbf16>
    tpu.vector_store %arg18[%c0_47, %c16], %125 {strides = array<i32>} : memref<8x32xbf16, #tpu.memory_space<vmem>>, vector<8x8xbf16>,
    %127 = vector.extract_strided_slice %64 {offsets = [0, 24], sizes = [8, 8], strides = [1, 1]} : vector<8x32xbf16> to vector<8x8xbf16>
    %128 = vector.extract_strided_slice %71 {offsets = [0, 24], sizes = [8, 8], strides = [1, 1]} : vector<8x32xbf16> to vector<8x8xbf16>
    %129 = vector.extract_strided_slice %72 {offsets = [0, 24], sizes = [8, 8], strides = [1, 1]} : vector<8x32xbf16> to vector<8x8xbf16>
    %cst_48 = arith.constant dense<0.000000e+00> : vector<8x8xf32>
    %130 = tpu.matmul %127, %128, %cst_48 {dimension_numbers = #tpu.dot_dimension_numbers<[1], [1], [0], [0], [0, 0, 1, 0], [], []>} : vector<8x8xbf16>, vector<8x8xbf16>, vector<8x8xf32> -> vector<8x8xf32>
    %cst_49 = arith.constant dense<0xFF800000> : vector<8xf32>
    %131 = vector.multi_reduction <maximumf>, %130, %cst_49 [1] : vector<8x8xf32> to vector<8xf32>
    %132 = vector.shape_cast %131 : vector<8xf32> to vector<8x1xf32>
    %133 = vector.broadcast %132 : vector<8x1xf32> to vector<8x8xf32>
    %134 = arith.subf %130, %133 : vector<8x8xf32>
    %135 = math.exp %134 : vector<8x8xf32>
    %cst_50 = arith.constant dense<0.000000e+00> : vector<8xf32>
    %136 = vector.multi_reduction <add>, %135, %cst_50 [1] : vector<8x8xf32> to vector<8xf32>
    %137 = vector.shape_cast %136 : vector<8xf32> to vector<8x1xf32>
    %138 = tpu.reciprocal %137 {approx = true} : vector<8x1xf32> -> vector<8x1xf32>
    %139 = vector.broadcast %138 : vector<8x1xf32> to vector<8x8xf32>
    %140 = arith.mulf %135, %139 : vector<8x8xf32>
    %141 = arith.truncf %140 : vector<8x8xf32> to vector<8x8xbf16>
    %cst_51 = arith.constant dense<0.000000e+00> : vector<8x8xf32>
    %142 = tpu.matmul %141, %129, %cst_51 {dimension_numbers = #tpu.dot_dimension_numbers<[1], [0], [0], [1], [0, 0, 1, 1], [], []>} : vector<8x8xbf16>, vector<8x8xbf16>, vector<8x8xf32> -> vector<8x8xf32>
    %143 = arith.truncf %142 : vector<8x8xf32> to vector<8x8xbf16>
    %c0_52 = arith.constant 0 : index
    %c24 = arith.constant 24 : index
    %144 = vector.load %arg18[%c0_52, %c24] : memref<8x32xbf16, #tpu.memory_space<vmem>>, vector<8x8xbf16>
    tpu.vector_store %arg18[%c0_52, %c24], %143 {strides = array<i32>} : memref<8x32xbf16, #tpu.memory_space<vmem>>, vector<8x8xbf16>,
    %c0_53 = arith.constant 0 : index
    %c0_54 = arith.constant 0 : index
    %145 = vector.load %arg18[%c0_53, %c0_54] : memref<8x32xbf16, #tpu.memory_space<vmem>>, vector<8x32xbf16>
    %c0_55 = arith.constant 0 : index
    %c0_56 = arith.constant 0 : index
    %146 = vector.load %arg9[%c0_55, %c0_56] : memref<32x32xbf16, #tpu.memory_space<vmem>>, vector<32x32xbf16>
    %cst_57 = arith.constant dense<0.000000e+00> : vector<8x32xf32>
    %147 = tpu.matmul %145, %146, %cst_57 {dimension_numbers = #tpu.dot_dimension_numbers<[1], [0], [0], [1], [0, 0, 1, 1], [], []>} : vector<8x32xbf16>, vector<32x32xbf16>, vector<8x32xf32> -> vector<8x32xf32>
    %c0_58 = arith.constant 0 : index
    %c0_59 = arith.constant 0 : index
    %148 = vector.load %arg10[%c0_58, %c0_59] : memref<1x32xf32, #tpu.memory_space<vmem>>, vector<1x32xf32>
    %149 = vector.broadcast %148 : vector<1x32xf32> to vector<8x32xf32>
    %150 = arith.addf %147, %149 : vector<8x32xf32>
    %151 = arith.addf %6, %150 : vector<8x32xf32>
    %cst_60 = arith.constant dense<0.000000e+00> : vector<8xf32>
    %152 = vector.multi_reduction <add>, %151, %cst_60 [1] : vector<8x32xf32> to vector<8xf32>
    %153 = vector.shape_cast %152 : vector<8xf32> to vector<8x1xf32>
    %cst_61 = arith.constant 3.200000e+01 : f32
    %154 = vector.broadcast %cst_61 : f32 to vector<8x1xf32>
    %155 = arith.divf %153, %154 : vector<8x1xf32>
    %156 = arith.mulf %151, %151 : vector<8x32xf32>
    %cst_62 = arith.constant dense<0.000000e+00> : vector<8xf32>
    %157 = vector.multi_reduction <add>, %156, %cst_62 [1] : vector<8x32xf32> to vector<8xf32>
    %158 = vector.shape_cast %157 : vector<8xf32> to vector<8x1xf32>
    %cst_63 = arith.constant 3.200000e+01 : f32
    %159 = vector.broadcast %cst_63 : f32 to vector<8x1xf32>
    %160 = arith.divf %158, %159 : vector<8x1xf32>
    %161 = arith.mulf %155, %155 : vector<8x1xf32>
    %162 = arith.subf %160, %161 : vector<8x1xf32>
    %163 = vector.broadcast %155 : vector<8x1xf32> to vector<8x32xf32>
    %164 = arith.subf %151, %163 : vector<8x32xf32>
    %cst_64 = arith.constant 9.99999974E-6 : f32
    %165 = vector.broadcast %cst_64 : f32 to vector<8x1xf32>
    %166 = arith.addf %162, %165 : vector<8x1xf32>
    %167 = math.rsqrt %166 : vector<8x1xf32>
    %168 = vector.broadcast %167 : vector<8x1xf32> to vector<8x32xf32>
    %169 = arith.mulf %164, %168 : vector<8x32xf32>
    %c0_65 = arith.constant 0 : index
    %c0_66 = arith.constant 0 : index
    %170 = vector.load %arg11[%c0_65, %c0_66] : memref<1x32xf32, #tpu.memory_space<vmem>>, vector<1x32xf32>
    %171 = vector.broadcast %170 : vector<1x32xf32> to vector<8x32xf32>
    %172 = arith.mulf %169, %171 : vector<8x32xf32>
    %c0_67 = arith.constant 0 : index
    %c0_68 = arith.constant 0 : index
    %173 = vector.load %arg12[%c0_67, %c0_68] : memref<1x32xf32, #tpu.memory_space<vmem>>, vector<1x32xf32>
    %174 = vector.broadcast %173 : vector<1x32xf32> to vector<8x32xf32>
    %175 = arith.addf %172, %174 : vector<8x32xf32>
    %176 = arith.truncf %175 : vector<8x32xf32> to vector<8x32xbf16>
    %c0_69 = arith.constant 0 : index
    %c0_70 = arith.constant 0 : index
    %177 = vector.load %arg13[%c0_69, %c0_70] : memref<32x128xbf16, #tpu.memory_space<vmem>>, vector<32x128xbf16>
    %cst_71 = arith.constant dense<0.000000e+00> : vector<8x128xf32>
    %178 = tpu.matmul %176, %177, %cst_71 {dimension_numbers = #tpu.dot_dimension_numbers<[1], [0], [0], [1], [0, 0, 1, 1], [], []>} : vector<8x32xbf16>, vector<32x128xbf16>, vector<8x128xf32> -> vector<8x128xf32>
    %c0_72 = arith.constant 0 : index
    %c0_73 = arith.constant 0 : index
    %179 = vector.load %arg14[%c0_72, %c0_73] : memref<1x128xf32, #tpu.memory_space<vmem>>, vector<1x128xf32>
    %180 = vector.broadcast %179 : vector<1x128xf32> to vector<8x128xf32>
    %181 = arith.addf %178, %180 : vector<8x128xf32>
    %cst_74 = arith.constant 1.702000e+00 : f32
    %182 = vector.broadcast %cst_74 : f32 to vector<8x128xf32>
    %183 = arith.mulf %182, %181 : vector<8x128xf32>
    %184 = arith.negf %183 : vector<8x128xf32>
    %185 = math.exp %184 : vector<8x128xf32>
    %cst_75 = arith.constant 1.000000e+00 : f32
    %186 = vector.broadcast %cst_75 : f32 to vector<8x128xf32>
    %187 = arith.addf %186, %185 : vector<8x128xf32>
    %188 = arith.divf %186, %187 : vector<8x128xf32>
    %189 = arith.mulf %181, %188 : vector<8x128xf32>
    %190 = arith.truncf %189 : vector<8x128xf32> to vector<8x128xbf16>
    %c0_76 = arith.constant 0 : index
    %c0_77 = arith.constant 0 : index
    %191 = vector.load %arg15[%c0_76, %c0_77] : memref<128x32xbf16, #tpu.memory_space<vmem>>, vector<128x32xbf16>
    %cst_78 = arith.constant dense<0.000000e+00> : vector<8x32xf32>
    %192 = tpu.matmul %190, %191, %cst_78 {dimension_numbers = #tpu.dot_dimension_numbers<[1], [0], [0], [1], [0, 0, 1, 1], [], []>} : vector<8x128xbf16>, vector<128x32xbf16>, vector<8x32xf32> -> vector<8x32xf32>
    %c0_79 = arith.constant 0 : index
    %c0_80 = arith.constant 0 : index
    %193 = vector.load %arg16[%c0_79, %c0_80] : memref<1x32xf32, #tpu.memory_space<vmem>>, vector<1x32xf32>
    %194 = vector.broadcast %193 : vector<1x32xf32> to vector<8x32xf32>
    %195 = arith.addf %192, %194 : vector<8x32xf32>
    %196 = arith.addf %151, %195 : vector<8x32xf32>
    %c0_81 = arith.constant 0 : index
    %c0_82 = arith.constant 0 : index
    %c0_83 = arith.constant 0 : index
    %197 = vector.load %arg17[%c0_81, %c0_82, %c0_83] : memref<1x8x32xf32, #tpu.memory_space<vmem>>, vector<1x8x32xf32>
    %198 = vector.shape_cast %197 : vector<1x8x32xf32> to vector<8x32xf32>
    %199 = vector.shape_cast %196 : vector<8x32xf32> to vector<1x8x32xf32>
    tpu.vector_store %arg17[%c0_81, %c0_82, %c0_83], %199 {strides = array<i32>} : memref<1x8x32xf32, #tpu.memory_space<vmem>>, vector<1x8x32xf32>,
    return
  }
  func.func @transform_0(%arg0: i32, %arg1: i32) -> (i32, i32, i32) {
    %c0_i32 = arith.constant 0 : i32
    %c0_i32_0 = arith.constant 0 : i32
    %c0_i32_1 = arith.constant 0 : i32
    return %arg0, %c0_i32, %c0_i32_0 : i32, i32, i32
  }
  func.func @transform_1(%arg0: i32, %arg1: i32) -> (i32, i32) {
    %c0_i32 = arith.constant 0 : i32
    %c0_i32_0 = arith.constant 0 : i32
    %c0_i32_1 = arith.constant 0 : i32
    return %c0_i32, %c0_i32_0 : i32, i32
  }
  func.func @transform_2(%arg0: i32, %arg1: i32) -> (i32, i32) {
    %c0_i32 = arith.constant 0 : i32
    %c0_i32_0 = arith.constant 0 : i32
    %c0_i32_1 = arith.constant 0 : i32
    return %c0_i32, %c0_i32_0 : i32, i32
  }
  func.func @transform_3(%arg0: i32, %arg1: i32) -> (i32, i32) {
    %c0_i32 = arith.constant 0 : i32
    %c0_i32_0 = arith.constant 0 : i32
    %c0_i32_1 = arith.constant 0 : i32
    return %c0_i32, %c0_i32_0 : i32, i32
  }
  func.func @transform_4(%arg0: i32, %arg1: i32) -> (i32, i32) {
    %c0_i32 = arith.constant 0 : i32
    %c0_i32_0 = arith.constant 0 : i32
    %c0_i32_1 = arith.constant 0 : i32
    return %c0_i32, %c0_i32_0 : i32, i32
  }
  func.func @transform_5(%arg0: i32, %arg1: i32) -> (i32, i32) {
    %c0_i32 = arith.constant 0 : i32
    %c0_i32_0 = arith.constant 0 : i32
    %c0_i32_1 = arith.constant 0 : i32
    return %c0_i32, %c0_i32_0 : i32, i32
  }
  func.func @transform_6(%arg0: i32, %arg1: i32) -> (i32, i32) {
    %c0_i32 = arith.constant 0 : i32
    %c0_i32_0 = arith.constant 0 : i32
    %c0_i32_1 = arith.constant 0 : i32
    return %c0_i32, %c0_i32_0 : i32, i32
  }
  func.func @transform_7(%arg0: i32, %arg1: i32) -> (i32, i32) {
    %c0_i32 = arith.constant 0 : i32
    %c0_i32_0 = arith.constant 0 : i32
    %c0_i32_1 = arith.constant 0 : i32
    return %c0_i32, %c0_i32_0 : i32, i32
  }
  func.func @transform_8(%arg0: i32, %arg1: i32) -> (i32, i32) {
    %c0_i32 = arith.constant 0 : i32
    %c0_i32_0 = arith.constant 0 : i32
    %c0_i32_1 = arith.constant 0 : i32
    return %c0_i32, %c0_i32_0 : i32, i32
  }
  func.func @transform_9(%arg0: i32, %arg1: i32) -> (i32, i32) {
    %c0_i32 = arith.constant 0 : i32
    %c0_i32_0 = arith.constant 0 : i32
    %c0_i32_1 = arith.constant 0 : i32
    return %c0_i32, %c0_i32_0 : i32, i32
  }
  func.func @transform_10(%arg0: i32, %arg1: i32) -> (i32, i32) {
    %c0_i32 = arith.constant 0 : i32
    %c0_i32_0 = arith.constant 0 : i32
    %c0_i32_1 = arith.constant 0 : i32
    return %c0_i32, %c0_i32_0 : i32, i32
  }
  func.func @transform_11(%arg0: i32, %arg1: i32) -> (i32, i32) {
    %c0_i32 = arith.constant 0 : i32
    %c0_i32_0 = arith.constant 0 : i32
    %c0_i32_1 = arith.constant 0 : i32
    return %c0_i32, %c0_i32_0 : i32, i32
  }
  func.func @transform_12(%arg0: i32, %arg1: i32) -> (i32, i32) {
    %c0_i32 = arith.constant 0 : i32
    %c0_i32_0 = arith.constant 0 : i32
    %c0_i32_1 = arith.constant 0 : i32
    return %c0_i32, %c0_i32_0 : i32, i32
  }
  func.func @transform_13(%arg0: i32, %arg1: i32) -> (i32, i32) {
    %c0_i32 = arith.constant 0 : i32
    %c0_i32_0 = arith.constant 0 : i32
    %c0_i32_1 = arith.constant 0 : i32
    return %c0_i32, %c0_i32_0 : i32, i32
  }
  func.func @transform_14(%arg0: i32, %arg1: i32) -> (i32, i32) {
    %c0_i32 = arith.constant 0 : i32
    %c0_i32_0 = arith.constant 0 : i32
    %c0_i32_1 = arith.constant 0 : i32
    return %c0_i32, %c0_i32_0 : i32, i32
  }
  func.func @transform_15(%arg0: i32, %arg1: i32) -> (i32, i32, i32) {
    %c0_i32 = arith.constant 0 : i32
    %c0_i32_0 = arith.constant 0 : i32
    return %arg0, %arg1, %c0_i32 : i32, i32, i32
  }
}

</mosaic_0001>

<bundles_post_ra>
// kernel: tpu_custom_call.1
= control target key start
LH: loop header
LB: loop body
LE: loop exit
PB: predicated region body
PF: predicated region fallthrough
CT: control target
= control target key end

     0   :  { %s3628_s0 = inlined_call_operand.hbm [shape: f32[2,8,32], index: 0, kind: input, shape index: {}]   ;;  %s3629_s1 = inlined_call_operand.hbm [shape: f32[1,32], index: 1, kind: input, shape index: {}]   ;;  %s3630_s2 = inlined_call_operand.hbm [shape: f32[1,32], index: 2, kind: input, shape index: {}]   ;;  %s3631_s3 = inlined_call_operand.hbm [shape: bf16[32,32], index: 3, kind: input, shape index: {}]   ;;  %s3632_s4 = inlined_call_operand.hbm [shape: f32[1,32], index: 4, kind: input, shape index: {}]   ;;  %s3633_s5 = inlined_call_operand.hbm [shape: bf16[32,64], index: 5, kind: input, shape index: {}]   ;;  %s3634_s6 = inlined_call_operand.hbm [shape: f32[1,64], index: 6, kind: input, shape index: {}]   ;;  %s3635_s7 = inlined_call_operand.hbm [shape: bf16[32,32], index: 7, kind: input, shape index: {}]   ;;  %s3636_s8 = inlined_call_operand.hbm [shape: f32[1,32], index: 8, kind: input, shape index: {}]   ;;  %s3637_s9 = inlined_call_operand.hbm [shape: f32[1,32], index: 9, kind: input, shape index: {}]   ;;  %s3638_s10 = inlined_call_operand.hbm [shape: f32[1,32], index: 10, kind: input, shape index: {}]   ;;  %s3639_s11 = inlined_call_operand.hbm [shape: bf16[32,128], index: 11, kind: input, shape index: {}]   ;;  %s3640_s12 = inlined_call_operand.hbm [shape: f32[1,128], index: 12, kind: input, shape index: {}]   ;;  %s3641_s13 = inlined_call_operand.hbm [shape: bf16[128,32], index: 13, kind: input, shape index: {}]   ;;  %s3642_s14 = inlined_call_operand.hbm [shape: f32[1,32], index: 14, kind: input, shape index: {}]   ;;  %s3643_s15 = inlined_call_operand.hbm [shape: f32[2,8,32], index: 15, kind: output, shape index: {}]  }
   0x1   :  { %3656 = sst [smem:[#allocation43_spill]] %s3628_s0 }
   0x2   :  { %3657 = sst [smem:[#allocation44_spill]] %s3629_s1 }
   0x3   :  { %3658 = sst [smem:[#allocation45_spill]] %s3630_s2 }
   0x4   :  { %3659 = sst [smem:[#allocation46_spill]] %s3631_s3 }
   0x5   :  { %3660 = sst [smem:[#allocation47_spill]] %s3643_s15 }
   0x6   :  { %20 = vsyncpa [#allocation4], 0 }
   0x7   :  { %22 = vsyncpa [#allocation4 + $0x1], 0 }
   0x8   :  { %23 = vsyncpa [#allocation7], 0 }
   0x9   :  { %24 = vsyncpa [#allocation10], 0 }
   0xa   :  { %25 = vsyncpa [#allocation13], 0 }
   0xb   :  { %26 = vsyncpa [#allocation16], 0 }
   0xc   :  { %27 = vsyncpa [#allocation19], 0 }
   0xd   :  { %28 = vsyncpa [#allocation22], 0 }
   0xe   :  { %29 = vsyncpa [#allocation25], 0 }
   0xf   :  { %30 = vsyncpa [#allocation5], 0 }
  0x10   :  { %32 = vsyncpa [#allocation5 + $0x1], 0  ;;  %s3013_s18 = smov 0   ;;  %s3015_s19 = smov 0  }
  0x11   :  { %s3017_s20 = smov 0   ;;  %s3019_s21 = smov 0  }
  0x12   :  { %s3021_s22 = smov 0   ;;  %s3023_s23 = smov 0  }
  0x13 LB: > { %3661 = sst [smem:[#allocation37_spill]] %s2881_s18  ;;  %s3644_s24 = sadd.s32 4294967295, %s2901_s23   ;;  %s2901_s23 = sphi %s3023_s23, %s38_s23   ;;  %s2897_s22 = sphi %s3021_s22, %s3702_s22   ;;  %s2893_s21 = sphi %s3019_s21, %s3701_s21   ;;  %s2889_s20 = sphi %s3017_s20, %s3700_s20   ;;  %s2885_s19 = sphi %s3015_s19, %s3698_s19   ;;  %s2881_s18 = sphi %s3013_s18, %s3697_s18  }
  0x14   : > { %3662 = sst [smem:[#allocation38_spill]] %s2885_s19  ;;  %p1890_p0 = scmp.ge.s32.totalorder %s2901_s23, 1 }
  0x15   : > { %3663 = sst [smem:[#allocation39_spill]] %s2889_s20  ;;  %p3047_p1 = scmp.eq.s32.totalorder %s3644_s24, 0 }
  0x16   : > { %3664 = sst [smem:[#allocation40_spill]] %s2893_s21  ;;  %p403_p2 = scmp.lt.s32.totalorder %s2901_s23, 3 }
  0x17   : > { %s3665_s25 = scalar_select %p3047_p1, 1, 0 }
  0x18   : > { %p3052_p3 = pnand %p1890_p0, %p403_p2  ;;  %s2903_s27 = smov [#allocation6]  }
  0x19   : > { %3666 = sst [smem:[#allocation41_spill]] %s3665_s25  ;;  %s416_s28 = sshll.u32 %s2903_s27, 4  ;;  %s417_s28 = int_to_ptr.vmem [resolvable:$true] %s416_s28 }
  0x1a   : > { %s3667_s26 = scalar_select %p3052_p3, 1, 0 }
  0x1b   : > { %p2170_p5 = pneg %p3052_p3  ;;  %s2904_s29 = smov [#allocation9]  }
  0x1c   : > { %3668 = sst [smem:[#allocation42_spill]] %s3667_s26  ;;  %s437_s30 = sshll.u32 %s2904_s29, 4  ;;  %s3065_s30 = int_to_ptr.vmem [resolvable:$true] %s437_s30 }
  0x1d   : > { %p3061_p6 = pnand %p2170_p5, %p3047_p1  ;;  %s2905_s17 = smov [#allocation12]  }
  0x1e   : > { %s3067_s24 = sshll.u32 %s2905_s17, 4  ;;  %s3670_s1 = sld [smem:[#allocation44_spill]]  ;;  %s462_s24 = int_to_ptr.vmem [resolvable:$true] %s3067_s24 }
  0x1f   : > { %p3077_p8 = pneg %p3061_p6 }
  0x24   : > { %s2369_s27 = scalar_lea.hbm %s3670_s1, 16 }
  0x25   : > { %p2370_p7 = scmp.ne.s32.totalorder %s3670_s1, %s2369_s27  ;;  %p2376_p11 = scmp.lt.u32.totalorder %s2369_s27, %s3670_s1 }
  0x27   : > { %p2372_p9 = pnand %p3077_p8, %p2370_p7 }
  0x29   : > { %p2373_p10 = pneg %p2372_p9 }
  0x2b   : > { %p2378_p12 = pnand %p2376_p11, %p2373_p10 }
  0x2d   : > { %2381 = shalt.err (!%p2378_p12)
}
  0x2e   : > { %s2382_s15 = scalar_lea.vmem %s417_s28, 16  ;;  %s2389_s0 = scalar_lea.vmem %s417_s28, 32 }
  0x2f   : > { %p2383_p13 = scmp.ne.s32.totalorder %s417_s28, %s2382_s15  ;;  %p2390_p5 = scmp.lt.s32.totalorder %s417_s28, %s417_s28 }
  0x30   : > { %p2391_p4 = scmp.lt.s32.totalorder %s2389_s0, %s2382_s15 }
  0x31   : > { %p2385_p0 = pnand %p2383_p13, %p3077_p8 }
  0x32   : > { %p2392_p3 = por %p2391_p4, %p2390_p5 }
  0x33   : > { %p2386_p2 = pneg %p2385_p0 }
  0x35   : > { %p2393_p1 = pnand %p2392_p3, %p2386_p2 }
  0x37   : > { %2396 = shalt.err (!%p2393_p1)
}
  0x38   : > { %2173 = dma.hbm_to_vmem [thread:$0]  (!%p3061_p6), %s3670_s1, 16, %s417_s28, [#allocation7]  }
  0x39   : > { %s3672_s3 = sld [smem:[#allocation46_spill]] }
  0x3f   : > { %s2397_s17 = scalar_lea.hbm %s3672_s3, 256 }
  0x40   : > { %p2398_p7 = scmp.ne.s32.totalorder %s3672_s3, %s2397_s17  ;;  %p2404_p1 = scmp.lt.u32.totalorder %s2397_s17, %s3672_s3 }
  0x42   : > { %p2400_p9 = pnand %p2398_p7, %p3077_p8 }
  0x44   : > { %p2401_p4 = pneg %p2400_p9 }
  0x46   : > { %p2406_p3 = pnand %p2404_p1, %p2401_p4 }
  0x48   : > { %2409 = shalt.err (!%p2406_p3)
}
  0x49   : > { %s2410_s28 = scalar_lea.vmem %s3065_s30, 256  ;;  %p2418_p13 = scmp.lt.s32.totalorder %s3065_s30, %s3065_s30 }
  0x4a   : > { %p2411_p10 = scmp.ne.s32.totalorder %s3065_s30, %s2410_s28  ;;  %p2419_p0 = scmp.lt.s32.totalorder %s2410_s28, %s2410_s28 }
  0x4c   : > { %p2413_p11 = pnand %p2411_p10, %p3077_p8  ;;  %p2420_p2 = por %p2419_p0, %p2418_p13 }
  0x4e   : > { %p2414_p12 = pneg %p2413_p11 }
  0x50   : > { %p2421_p5 = pnand %p2420_p2, %p2414_p12 }
  0x52   : > { %2424 = shalt.err (!%p2421_p5)
}
  0x53   : > { %s2906_s18 = smov 64   ;;  %s2907_s19 = smov 4  }
  0x54   : > { %2179 = dma.hbm_to_vmem [thread:$0]  (!%p3061_p6), %s3672_s3, 256, %s3065_s30, [#allocation10], %s2906_s18, %s2906_s18, %s2907_s19  }
  0x55   : > { %s2425_s17 = scalar_lea.hbm %s3633_s5, 256 }
  0x56   : > { %p2426_p7 = scmp.ne.s32.totalorder %s3633_s5, %s2425_s17  ;;  %p2432_p1 = scmp.lt.u32.totalorder %s2425_s17, %s3633_s5 }
  0x58   : > { %p2428_p9 = pnand %p2426_p7, %p3077_p8 }
  0x5a   : > { %p2429_p4 = pneg %p2428_p9 }
  0x5c   : > { %p2434_p3 = pnand %p2432_p1, %p2429_p4 }
  0x5e   : > { %2437 = shalt.err (!%p2434_p3)
}
  0x5f   : > { %s2438_s21 = scalar_lea.vmem %s462_s24, 256  ;;  %p2446_p13 = scmp.lt.s32.totalorder %s462_s24, %s462_s24 }
  0x60   : > { %p2439_p10 = scmp.ne.s32.totalorder %s462_s24, %s2438_s21  ;;  %p2447_p0 = scmp.lt.s32.totalorder %s2438_s21, %s2438_s21 }
  0x62   : > { %p2441_p11 = pnand %p2439_p10, %p3077_p8  ;;  %p2448_p2 = por %p2447_p0, %p2446_p13 }
  0x64   : > { %p2442_p12 = pneg %p2441_p11 }
  0x66   : > { %p2449_p5 = pnand %p2448_p2, %p2442_p12 }
  0x68   : > { %2452 = shalt.err (!%p2449_p5)
}
  0x69   : > { %2185 = dma.hbm_to_vmem [thread:$0]  (!%p3061_p6), %s3633_s5, 256, %s462_s24, [#allocation13], %s2906_s18, %s2906_s18, %s2907_s19  }
  0x6a   : > { %s2908_s26 = smov [#allocation15]   ;;  %s2909_s27 = smov [#allocation18]  }
  0x6b   : > { %s485_s25 = sshll.u32 %s2908_s26, 4  ;;  %s510_s17 = sshll.u32 %s2909_s27, 4  ;;  %s486_s25 = int_to_ptr.vmem [resolvable:$true] %s485_s25  ;;  %s511_s17 = int_to_ptr.vmem [resolvable:$true] %s510_s17 }
  0x6c   : > { %s2453_s28 = scalar_lea.hbm %s3635_s7, 256 }
  0x6d   : > { %p2454_p7 = scmp.ne.s32.totalorder %s3635_s7, %s2453_s28  ;;  %p2460_p1 = scmp.lt.u32.totalorder %s2453_s28, %s3635_s7 }
  0x6f   : > { %p2456_p9 = pnand %p2454_p7, %p3077_p8 }
  0x71   : > { %p2457_p4 = pneg %p2456_p9 }
  0x73   : > { %p2462_p3 = pnand %p2460_p1, %p2457_p4 }
  0x75   : > { %2465 = shalt.err (!%p2462_p3)
}
  0x76   : > { %s2466_s24 = scalar_lea.vmem %s486_s25, 256  ;;  %p2474_p13 = scmp.lt.s32.totalorder %s486_s25, %s486_s25 }
  0x77   : > { %p2467_p10 = scmp.ne.s32.totalorder %s486_s25, %s2466_s24  ;;  %p2475_p0 = scmp.lt.s32.totalorder %s2466_s24, %s2466_s24 }
  0x79   : > { %p2469_p11 = pnand %p2467_p10, %p3077_p8  ;;  %p2476_p2 = por %p2475_p0, %p2474_p13 }
  0x7b   : > { %p2470_p12 = pneg %p2469_p11 }
  0x7d   : > { %p2477_p5 = pnand %p2476_p2, %p2470_p12 }
  0x7f   : > { %2480 = shalt.err (!%p2477_p5)
}
  0x80   : > { %2191 = dma.hbm_to_vmem [thread:$0]  (!%p3061_p6), %s3635_s7, 256, %s486_s25, [#allocation16], %s2906_s18, %s2906_s18, %s2907_s19  }
  0x81   : > { %s2481_s27 = scalar_lea.hbm %s3637_s9, 16 }
  0x82   : > { %p2482_p7 = scmp.ne.s32.totalorder %s3637_s9, %s2481_s27  ;;  %p2488_p1 = scmp.lt.u32.totalorder %s2481_s27, %s3637_s9 }
  0x84   : > { %p2484_p9 = pnand %p2482_p7, %p3077_p8 }
  0x86   : > { %p2485_p4 = pneg %p2484_p9 }
  0x88   : > { %p2490_p3 = pnand %p2488_p1, %p2485_p4 }
  0x8a   : > { %2493 = shalt.err (!%p2490_p3)
}
  0x8b   : > { %s2494_s1 = scalar_lea.vmem %s511_s17, 16  ;;  %s2501_s25 = scalar_lea.vmem %s511_s17, 32 }
  0x8c   : > { %p2495_p10 = scmp.ne.s32.totalorder %s511_s17, %s2494_s1  ;;  %p2502_p13 = scmp.lt.s32.totalorder %s511_s17, %s511_s17 }
  0x8d   : > { %p2503_p0 = scmp.lt.s32.totalorder %s2501_s25, %s2494_s1 }
  0x8e   : > { %p2497_p11 = pnand %p2495_p10, %p3077_p8 }
  0x8f   : > { %p2504_p2 = por %p2503_p0, %p2502_p13 }
  0x90   : > { %p2498_p12 = pneg %p2497_p11 }
  0x92   : > { %p2505_p5 = pnand %p2504_p2, %p2498_p12 }
  0x94   : > { %2508 = shalt.err (!%p2505_p5)
}
  0x95   : > { %2197 = dma.hbm_to_vmem [thread:$0]  (!%p3061_p6), %s3637_s9, 16, %s511_s17, [#allocation19]  }
  0x96   : > { %s2910_s20 = smov [#allocation21]   ;;  %s2911_s26 = smov [#allocation24]  }
  0x97   : > { %s531_s30 = sshll.u32 %s2910_s20, 4  ;;  %s555_s27 = sshll.u32 %s2911_s26, 4  ;;  %s532_s30 = int_to_ptr.vmem [resolvable:$true] %s531_s30  ;;  %s556_s27 = int_to_ptr.vmem [resolvable:$true] %s555_s27 }
  0x98   : > { %s2509_s28 = scalar_lea.hbm %s3639_s11, 256 }
  0x99   : > { %p2510_p7 = scmp.ne.s32.totalorder %s3639_s11, %s2509_s28  ;;  %p2516_p1 = scmp.lt.u32.totalorder %s2509_s28, %s3639_s11 }
  0x9b   : > { %p2512_p9 = pnand %p2510_p7, %p3077_p8 }
  0x9d   : > { %p2513_p4 = pneg %p2512_p9 }
  0x9f   : > { %p2518_p3 = pnand %p2516_p1, %p2513_p4 }
  0xa1   : > { %2521 = shalt.err (!%p2518_p3)
}
  0xa2   : > { %s2522_s17 = scalar_lea.vmem %s532_s30, 256  ;;  %p2530_p13 = scmp.lt.s32.totalorder %s532_s30, %s532_s30 }
  0xa3   : > { %p2523_p10 = scmp.ne.s32.totalorder %s532_s30, %s2522_s17  ;;  %p2531_p0 = scmp.lt.s32.totalorder %s2522_s17, %s2522_s17 }
  0xa5   : > { %p2525_p11 = pnand %p2523_p10, %p3077_p8  ;;  %p2532_p2 = por %p2531_p0, %p2530_p13 }
  0xa7   : > { %p2526_p12 = pneg %p2525_p11 }
  0xa9   : > { %p2533_p5 = pnand %p2532_p2, %p2526_p12 }
  0xab   : > { %2536 = shalt.err (!%p2533_p5)
}
  0xac   : > { %2203 = dma.hbm_to_vmem [thread:$0]  (!%p3061_p6), %s3639_s11, 256, %s532_s30, [#allocation22], %s2906_s18, %s2906_s18, %s2907_s19  }
  0xad   : > { %s2537_s0 = scalar_lea.hbm %s3641_s13, 1024 }
  0xae   : > { %p2538_p7 = scmp.ne.s32.totalorder %s3641_s13, %s2537_s0  ;;  %p2544_p1 = scmp.lt.u32.totalorder %s2537_s0, %s3641_s13 }
  0xb0   : > { %p2540_p9 = pnand %p2538_p7, %p3077_p8 }
  0xb2   : > { %p2541_p4 = pneg %p2540_p9 }
  0xb4   : > { %p2546_p3 = pnand %p2544_p1, %p2541_p4 }
  0xb6   : > { %2549 = shalt.err (!%p2546_p3)
}
  0xb7   : > { %s2550_s24 = scalar_lea.vmem %s556_s27, 1024  ;;  %p2558_p13 = scmp.lt.s32.totalorder %s556_s27, %s556_s27 }
  0xb8   : > { %p2551_p10 = scmp.ne.s32.totalorder %s556_s27, %s2550_s24  ;;  %p2559_p0 = scmp.lt.s32.totalorder %s2550_s24, %s2550_s24 }
  0xba   : > { %p2553_p11 = pnand %p2551_p10, %p3077_p8  ;;  %p2560_p2 = por %p2559_p0, %p2558_p13 }
  0xbc   : > { %p2554_p12 = pneg %p2553_p11 }
  0xbe   : > { %p2561_p5 = pnand %p2560_p2, %p2554_p12 }
  0xc0   : > { %2564 = shalt.err (!%p2561_p5)
}
  0xc1   : > { %2209 = dma.hbm_to_vmem [thread:$0]  (!%p3061_p6), %s3641_s13, 1024, %s556_s27, [#allocation25], %s2906_s18, %s2906_s18, %s2907_s19  }
  0xc2   : > { %s2912_s3 = smov [#allocation8]   ;;  %s2913_s26 = smov [#allocation11]  }
  0xc3   : > { %s427_s20 = sshll.u32 %s2912_s3, 4  ;;  %s451_s15 = sshll.u32 %s2913_s26, 4  ;;  %s428_s20 = int_to_ptr.vmem [resolvable:$true] %s427_s20  ;;  %s452_s15 = int_to_ptr.vmem [resolvable:$true] %s451_s15 }
  0xc4   : > { %s3673_s2 = sld [smem:[#allocation45_spill]] }
  0xca   : > { %s2565_s21 = scalar_lea.hbm %s3673_s2, 16 }
  0xcb   : > { %p2566_p7 = scmp.ne.s32.totalorder %s3673_s2, %s2565_s21  ;;  %p2572_p1 = scmp.lt.u32.totalorder %s2565_s21, %s3673_s2 }
  0xcd   : > { %p2568_p9 = pnand %p2566_p7, %p3077_p8 }
  0xcf   : > { %p2569_p4 = pneg %p2568_p9 }
  0xd1   : > { %p2574_p3 = pnand %p2572_p1, %p2569_p4 }
  0xd3   : > { %2577 = shalt.err (!%p2574_p3)
}
  0xd4   : > { %s2578_s18 = scalar_lea.vmem %s428_s20, 16  ;;  %s2585_s19 = scalar_lea.vmem %s428_s20, 32 }
  0xd5   : > { %p2579_p10 = scmp.ne.s32.totalorder %s428_s20, %s2578_s18  ;;  %p2586_p13 = scmp.lt.s32.totalorder %s428_s20, %s428_s20 }
  0xd6   : > { %p2587_p0 = scmp.lt.s32.totalorder %s2585_s19, %s2578_s18 }
  0xd7   : > { %p2581_p11 = pnand %p2579_p10, %p3077_p8 }
  0xd8   : > { %p2588_p2 = por %p2587_p0, %p2586_p13 }
  0xd9   : > { %p2582_p12 = pneg %p2581_p11 }
  0xdb   : > { %p2589_p5 = pnand %p2588_p2, %p2582_p12 }
  0xdd   : > { %2592 = shalt.err (!%p2589_p5)
}
  0xde   : > { %2176 = dma.hbm_to_vmem [thread:$0]  (!%p3061_p6), %s3673_s2, 16, %s428_s20, [#allocation7]  }
  0xdf   : > { %s2593_s0 = scalar_lea.hbm %s3632_s4, 16 }
  0xe0   : > { %p2594_p7 = scmp.ne.s32.totalorder %s3632_s4, %s2593_s0  ;;  %p2600_p1 = scmp.lt.u32.totalorder %s2593_s0, %s3632_s4 }
  0xe2   : > { %p2596_p9 = pnand %p2594_p7, %p3077_p8 }
  0xe4   : > { %p2597_p4 = pneg %p2596_p9 }
  0xe6   : > { %p2602_p3 = pnand %p2600_p1, %p2597_p4 }
  0xe8   : > { %2605 = shalt.err (!%p2602_p3)
}
  0xe9   : > { %s2606_s24 = scalar_lea.vmem %s452_s15, 16  ;;  %s2613_s20 = scalar_lea.vmem %s452_s15, 32 }
  0xea   : > { %p2607_p10 = scmp.ne.s32.totalorder %s452_s15, %s2606_s24  ;;  %p2614_p13 = scmp.lt.s32.totalorder %s452_s15, %s452_s15 }
  0xeb   : > { %p2615_p0 = scmp.lt.s32.totalorder %s2613_s20, %s2606_s24 }
  0xec   : > { %p2609_p11 = pnand %p2607_p10, %p3077_p8 }
  0xed   : > { %p2616_p2 = por %p2615_p0, %p2614_p13 }
  0xee   : > { %p2610_p12 = pneg %p2609_p11 }
  0xf0   : > { %p2617_p5 = pnand %p2616_p2, %p2610_p12 }
  0xf2   : > { %2620 = shalt.err (!%p2617_p5)
}
  0xf3   : > { %2182 = dma.hbm_to_vmem [thread:$0]  (!%p3061_p6), %s3632_s4, 16, %s452_s15, [#allocation10]  }
  0xf4   : > { %s2914_s19 = smov [#allocation14]   ;;  %s2915_s17 = smov [#allocation17]  }
  0xf5   : > { %s475_s27 = sshll.u32 %s2914_s19, 4  ;;  %s499_s3 = sshll.u32 %s2915_s17, 4  ;;  %s476_s27 = int_to_ptr.vmem [resolvable:$true] %s475_s27  ;;  %s500_s3 = int_to_ptr.vmem [resolvable:$true] %s499_s3 }
  0xf6   : > { %s2621_s28 = scalar_lea.hbm %s3634_s6, 16 }
  0xf7   : > { %p2622_p7 = scmp.ne.s32.totalorder %s3634_s6, %s2621_s28  ;;  %p2628_p1 = scmp.lt.u32.totalorder %s2621_s28, %s3634_s6 }
  0xf9   : > { %p2624_p9 = pnand %p2622_p7, %p3077_p8 }
  0xfb   : > { %p2625_p4 = pneg %p2624_p9 }
  0xfd   : > { %p2630_p3 = pnand %p2628_p1, %p2625_p4 }
  0xff   : > { %2633 = shalt.err (!%p2630_p3)
}
 0x100   : > { %s2634_s15 = scalar_lea.vmem %s476_s27, 16  ;;  %s2641_s20 = scalar_lea.vmem %s476_s27, 32 }
 0x101   : > { %p2635_p10 = scmp.ne.s32.totalorder %s476_s27, %s2634_s15  ;;  %p2642_p13 = scmp.lt.s32.totalorder %s476_s27, %s476_s27 }
 0x102   : > { %p2643_p0 = scmp.lt.s32.totalorder %s2641_s20, %s2634_s15 }
 0x103   : > { %p2637_p11 = pnand %p2635_p10, %p3077_p8 }
 0x104   : > { %p2644_p2 = por %p2643_p0, %p2642_p13 }
 0x105   : > { %p2638_p12 = pneg %p2637_p11 }
 0x107   : > { %p2645_p5 = pnand %p2644_p2, %p2638_p12 }
 0x109   : > { %2648 = shalt.err (!%p2645_p5)
}
 0x10a   : > { %2188 = dma.hbm_to_vmem [thread:$0]  (!%p3061_p6), %s3634_s6, 16, %s476_s27, [#allocation13]  }
 0x10b   : > { %s2649_s26 = scalar_lea.hbm %s3636_s8, 16 }
 0x10c   : > { %p2650_p7 = scmp.ne.s32.totalorder %s3636_s8, %s2649_s26  ;;  %p2656_p1 = scmp.lt.u32.totalorder %s2649_s26, %s3636_s8 }
 0x10e   : > { %p2652_p9 = pnand %p2650_p7, %p3077_p8 }
 0x110   : > { %p2653_p4 = pneg %p2652_p9 }
 0x112   : > { %p2658_p3 = pnand %p2656_p1, %p2653_p4 }
 0x114   : > { %2661 = shalt.err (!%p2658_p3)
}
 0x115   : > { %s2662_s25 = scalar_lea.vmem %s500_s3, 16  ;;  %s2669_s27 = scalar_lea.vmem %s500_s3, 32 }
 0x116   : > { %p2663_p10 = scmp.ne.s32.totalorder %s500_s3, %s2662_s25  ;;  %p2670_p13 = scmp.lt.s32.totalorder %s500_s3, %s500_s3 }
 0x117   : > { %p2671_p0 = scmp.lt.s32.totalorder %s2669_s27, %s2662_s25 }
 0x118   : > { %p2665_p11 = pnand %p2663_p10, %p3077_p8 }
 0x119   : > { %p2672_p2 = por %p2671_p0, %p2670_p13 }
 0x11a   : > { %p2666_p12 = pneg %p2665_p11 }
 0x11c   : > { %p2673_p5 = pnand %p2672_p2, %p2666_p12 }
 0x11e   : > { %2676 = shalt.err (!%p2673_p5)
}
 0x11f   : > { %2194 = dma.hbm_to_vmem [thread:$0]  (!%p3061_p6), %s3636_s8, 16, %s500_s3, [#allocation16]  }
 0x120   : > { %s2916_s20 = smov [#allocation20]   ;;  %s2917_s18 = smov [#allocation23]  }
 0x121   : > { %s521_s30 = sshll.u32 %s2916_s20, 4  ;;  %s545_s19 = sshll.u32 %s2917_s18, 4  ;;  %s522_s30 = int_to_ptr.vmem [resolvable:$true] %s521_s30  ;;  %s546_s19 = int_to_ptr.vmem [resolvable:$true] %s545_s19 }
 0x122   : > { %s2677_s0 = scalar_lea.hbm %s3638_s10, 16 }
 0x123   : > { %p2678_p7 = scmp.ne.s32.totalorder %s3638_s10, %s2677_s0  ;;  %p2684_p1 = scmp.lt.u32.totalorder %s2677_s0, %s3638_s10 }
 0x125   : > { %p2680_p9 = pnand %p2678_p7, %p3077_p8 }
 0x127   : > { %p2681_p4 = pneg %p2680_p9 }
 0x129   : > { %p2686_p3 = pnand %p2684_p1, %p2681_p4 }
 0x12b   : > { %2689 = shalt.err (!%p2686_p3)
}
 0x12c   : > { %s2690_s3 = scalar_lea.vmem %s522_s30, 16  ;;  %s2697_s27 = scalar_lea.vmem %s522_s30, 32 }
 0x12d   : > { %p2691_p10 = scmp.ne.s32.totalorder %s522_s30, %s2690_s3  ;;  %p2698_p13 = scmp.lt.s32.totalorder %s522_s30, %s522_s30 }
 0x12e   : > { %p2699_p0 = scmp.lt.s32.totalorder %s2697_s27, %s2690_s3 }
 0x12f   : > { %p2693_p11 = pnand %p2691_p10, %p3077_p8 }
 0x130   : > { %p2700_p2 = por %p2699_p0, %p2698_p13 }
 0x131   : > { %p2694_p12 = pneg %p2693_p11 }
 0x133   : > { %p2701_p5 = pnand %p2700_p2, %p2694_p12 }
 0x135   : > { %2704 = shalt.err (!%p2701_p5)
}
 0x136   : > { %2200 = dma.hbm_to_vmem [thread:$0]  (!%p3061_p6), %s3638_s10, 16, %s522_s30, [#allocation19]  }
 0x137   : > { %s2705_s17 = scalar_lea.hbm %s3640_s12, 16 }
 0x138   : > { %p2706_p7 = scmp.ne.s32.totalorder %s3640_s12, %s2705_s17  ;;  %p2712_p1 = scmp.lt.u32.totalorder %s2705_s17, %s3640_s12 }
 0x13a   : > { %p2708_p9 = pnand %p2706_p7, %p3077_p8 }
 0x13c   : > { %p2709_p4 = pneg %p2708_p9 }
 0x13e   : > { %p2714_p3 = pnand %p2712_p1, %p2709_p4 }
 0x140   : > { %2717 = shalt.err (!%p2714_p3)
}
 0x141   : > { %s2718_s1 = scalar_lea.vmem %s546_s19, 16  ;;  %s2725_s30 = scalar_lea.vmem %s546_s19, 32 }
 0x142   : > { %p2719_p10 = scmp.ne.s32.totalorder %s546_s19, %s2718_s1  ;;  %p2726_p13 = scmp.lt.s32.totalorder %s546_s19, %s546_s19 }
 0x143   : > { %p2727_p0 = scmp.lt.s32.totalorder %s2725_s30, %s2718_s1 }
 0x144   : > { %p2721_p11 = pnand %p2719_p10, %p3077_p8 }
 0x145   : > { %p2728_p2 = por %p2727_p0, %p2726_p13 }
 0x146   : > { %p2722_p12 = pneg %p2721_p11 }
 0x148   : > { %p2729_p5 = pnand %p2728_p2, %p2722_p12 }
 0x14a   : > { %2732 = shalt.err (!%p2729_p5)
}
 0x14b   : > { %2206 = dma.hbm_to_vmem [thread:$0]  (!%p3061_p6), %s3640_s12, 16, %s546_s19, [#allocation22]  }
 0x14c   : > { %s2918_s27 = smov [#allocation26]   ;;  %s2733_s18 = scalar_lea.hbm %s3642_s14, 16 }
 0x14d   : > { %s569_s24 = sshll.u32 %s2918_s27, 4  ;;  %p2734_p7 = scmp.ne.s32.totalorder %s3642_s14, %s2733_s18  ;;  %s570_s24 = int_to_ptr.vmem [resolvable:$true] %s569_s24 }
 0x14e   : > { %p2740_p1 = scmp.lt.u32.totalorder %s2733_s18, %s3642_s14 }
 0x14f   : > { %p2736_p9 = pnand %p2734_p7, %p3077_p8 }
 0x151   : > { %p2737_p4 = pneg %p2736_p9 }
 0x153   : > { %p2742_p3 = pnand %p2740_p1, %p2737_p4 }
 0x155   : > { %2745 = shalt.err (!%p2742_p3)
}
 0x156   : > { %s2746_s19 = scalar_lea.vmem %s570_s24, 16  ;;  %s2753_s21 = scalar_lea.vmem %s570_s24, 32 }
 0x157   : > { %p2747_p10 = scmp.ne.s32.totalorder %s570_s24, %s2746_s19  ;;  %p2754_p13 = scmp.lt.s32.totalorder %s570_s24, %s570_s24 }
 0x158   : > { %p2755_p0 = scmp.lt.s32.totalorder %s2753_s21, %s2746_s19 }
 0x159   : > { %p2749_p11 = pnand %p2747_p10, %p3077_p8 }
 0x15a   : > { %p2756_p2 = por %p2755_p0, %p2754_p13 }
 0x15b   : > { %p2750_p12 = pneg %p2749_p11 }
 0x15d   : > { %p2757_p5 = pnand %p2756_p2, %p2750_p12 }
 0x15f   : > { %2760 = shalt.err (!%p2757_p5)
}
 0x160   : > { %s3674_s25 = sld [smem:[#allocation39_spill]]  ;;  %s3675_s3 = sld [smem:[#allocation38_spill]] }
 0x161   : > { %s3676_s29 = sld [smem:[#allocation37_spill]]  ;;  %s3677_s27 = sld [smem:[#allocation41_spill]] }
 0x162   : > { %2212 = dma.hbm_to_vmem [thread:$0]  (!%p3061_p6), %s3642_s14, 16, %s570_s24, [#allocation25]  }
 0x163   : > { %s1889_s15 = sadd.s32 4294967294, %s2901_s23   ;;  %s50_s20 = sadd.s32 1, %s2897_s22 }
 0x164   : > { %p52_p8 = scmp.ge.s32.totalorder %s50_s20, 2  ;;  %p65_p9 = scmp.eq.s32.totalorder %s2901_s23, 0 }
 0x165   : > { %s3679_s17 = sadd.s32 4294967295, %s2901_s23   ;;  %p396_p13 = scmp.eq.s32.totalorder %s1889_s15, 1 }
 0x166   : > { %s57_s16 = sadd.s32 1, %s3674_s25  ;;  %p64_p7 = scmp.ne.s32.totalorder %s3674_s25, %s3675_s3 }
 0x167   : > { %s3704_s20 = smov (%p52_p8, %s50_s20), 0  ;;  %p70_p1 = scmp.ne.s32.totalorder %s3675_s3, %s3676_s29 }
 0x168   : > { %p3356_p4 = por %p65_p9, %p64_p7  ;;  %s54_s24 = ssub.s32 %s2897_s22, %s3704_s20 }
 0x169   : > { %p390_p6 = scmp.eq.s32.totalorder %s3679_s17, 1  ;;  %p55_p3 = scmp.eq.s32.totalorder %s54_s24, 0 }
 0x16a   : > { %p3680_p10 = scmp.ne.s32.totalorder %s3677_s27, 0  ;;  %p3379_p0 = por %p396_p13, %p70_p1 }
 0x16b   : > { %p3372_p12 = por %p390_p6, %p64_p7  ;;  %p2235_p2 = scmp.lt.s32.totalorder %s2901_s23, 2 }
 0x16c   : > { %p3368_p11 = por %p3680_p10, %p70_p1  ;;  %s580_s21 = sand.u32 1, %s3674_s25  }
 0x16d   : > { %s3682_s0 = scalar_select %p3372_p12, 1, 0 }
 0x16e   : > { %s3377_s28 = scalar_select %p55_p3, %s3674_s25, %s57_s16  }
 0x16f   : > { %s3683_s19 = scalar_select %p3379_p0, 1, 0 }
 0x170   : > { %s1907_s1 = sshll.u32 %s2897_s22, 7  ;;  %s1906_s30 = sshll.u32 %s580_s21, 3 }
 0x171   : > { %s3684_s27 = sld [smem:[#allocation43_spill]]  ;;  %s584_s15 = scalar_lea.vmem [#allocation3], %s1906_s30 }
 0x172   : > { %s591_s16 = sshll.u32 %s584_s15, 4  ;;  %p3393_p5 = pnand %p2235_p2, %p3356_p4  ;;  %s3397_s16 = int_to_ptr.vmem [resolvable:$true] %s591_s16 }
 0x173   : > { %s581_s25 = scalar_lea.sflag [#allocation4], %s580_s21 }
 0x174   : > { %p2763_p7 = pneg %p3393_p5 }
 0x177   : > { %s3389_s24 = scalar_lea.hbm %s3684_s27, %s1907_s1  ;;  %s2766_s18 = scalar_lea.hbm %s3684_s27, 256 }
 0x178   : > { %s2761_s2 = scalar_lea.hbm %s3389_s24, 128  ;;  %p2767_p4 = scmp.lt.u32.totalorder %s3389_s24, %s3684_s27 }
 0x179   : > { %p2762_p8 = scmp.ne.s32.totalorder %s3389_s24, %s2761_s2  ;;  %p2768_p6 = scmp.lt.u32.totalorder %s2766_s18, %s2761_s2 }
 0x17a   : > { %p2770_p10 = scmp.lt.u32.totalorder %s2761_s2, %s3389_s24 }
 0x17b   : > { %p2764_p9 = pnand %p2763_p7, %p2762_p8  ;;  %p2769_p3 = por %p2768_p6, %p2767_p4 }
 0x17d   : > { %p2765_p1 = pneg %p2764_p9  ;;  %p2771_p13 = por %p2770_p10, %p2769_p3 }
 0x17f   : > { %p2772_p2 = pnand %p2771_p13, %p2765_p1 }
 0x181   : > { %2775 = shalt.err (!%p2772_p2)
}
 0x182   : > { %s2776_s21 = scalar_lea.vmem %s3397_s16, 128  ;;  %s2919_s15 = smov [#allocation3]  }
 0x183   : > { %p2777_p8 = scmp.ne.s32.totalorder %s3397_s16, %s2776_s21  ;;  %s2781_s1 = sshll.u32 %s2919_s15, 4  ;;  %s2782_s1 = int_to_ptr.vmem [resolvable:$false] %s2781_s1 }
 0x184   : > { %s2783_s30 = scalar_lea.vmem %s2782_s1, 256  ;;  %p2784_p12 = scmp.lt.s32.totalorder %s3397_s16, %s2782_s1 }
 0x185   : > { %p2779_p9 = pnand %p2777_p8, %p2763_p7  ;;  %p2785_p4 = scmp.lt.s32.totalorder %s2783_s30, %s2776_s21 }
 0x187   : > { %p2780_p0 = pneg %p2779_p9  ;;  %p2786_p6 = por %p2785_p4, %p2784_p12 }
 0x189   : > { %p2787_p3 = pnand %p2786_p6, %p2780_p0 }
 0x18b   : > { %2790 = shalt.err (!%p2787_p3)
}
 0x18c   : > { %2216 = dma.hbm_to_vmem [thread:$0]  (!%p3393_p5), %s3389_s24, 128, %s3397_s16, %s581_s25  }
 0x18d   : > { %s3686_s2 = sld [smem:[#allocation42_spill]] }
 0x193   : > { %p3687_p1 = scmp.ne.s32.totalorder %s3686_s2, 0 }
 0x194   : > { %s3688_s18 = sld [smem:[#allocation38_spill]] (!%p3687_p1) }
 0x195   : > { %600 = sbr.rel (%p3687_p1) target bundleno = 2739 (0xab3), region = 80 }
 0x19a   : > { %s3427_s3 = sand.u32 (!%p3687_p1), 1, %s3688_s18  }
 0x19b   : > { %s1909_s29 = sshll.u32 (!%p3687_p1), %s3427_s3, 3  ;;  %s603_s21 = scalar_lea.sflag (!%p3687_p1), [#allocation4], %s3427_s3 }
 0x19c   : > { %s606_s15 = scalar_lea.vmem [#allocation3], %s1909_s29 }
 0x19d   : > { %2844 = dma.done.wait (%p3368_p11), %s603_s21, 128  }
 0x19e   : > { %2846 = vsyncadd (%p3368_p11), %s603_s21, 4294967168  ;;  %s3689_s24 = sld [smem:[#allocation41_spill]] }
 0x1a4   : > { %p3690_p12 = scmp.ne.s32.totalorder %s3689_s24, 0 }
 0x1a6   : > { %2848 = dma.done.wait (%p3690_p12), [#allocation7], 32  }
 0x1a7   : > { %2850 = vsyncadd (%p3690_p12), [#allocation7], 4294967264 }
 0x1a8   : > { %2852 = dma.done.wait (%p3690_p12), [#allocation10], 272  }
 0x1a9   : > { %2854 = vsyncadd (%p3690_p12), [#allocation10], 4294967024 }
 0x1aa   : > { %2856 = dma.done.wait (%p3690_p12), [#allocation13], 272  }
 0x1ab   : > { %2858 = vsyncadd (%p3690_p12), [#allocation13], 4294967024 }
 0x1ac   : > { %2860 = dma.done.wait (%p3690_p12), [#allocation16], 272  }
 0x1ad   : > { %2862 = vsyncadd (%p3690_p12), [#allocation16], 4294967024 }
 0x1ae   : > { %2864 = dma.done.wait (%p3690_p12), [#allocation19], 32  }
 0x1af   : > { %2866 = vsyncadd (%p3690_p12), [#allocation19], 4294967264 }
 0x1b0   : > { %2868 = dma.done.wait (%p3690_p12), [#allocation22], 272  }
 0x1b1   : > { %2870 = vsyncadd (%p3690_p12), [#allocation22], 4294967024 }
 0x1b2   : > { %2872 = dma.done.wait (%p3690_p12), [#allocation25], 1040  }
 0x1b3   : > { %2874 = vsyncadd (%p3690_p12), [#allocation25], 4294966256  ;;  %vm714_vm0 = vcmask 261120   ;;  %v3465_v0 = vld [vmem:[%s606_s15] sm:$0xff]  ;;  %v2327_v4 = vld [vmem:[#allocation9] sm:$0xff]   ;;  %v2920_v5 = vmov 0.0  }
 0x1b4   : > { %v748_v1 = vsel %vm714_vm0, %v3465_v0, 0.0  ;;  %v752_v2 = vmul.f32 %v3465_v0, %v3465_v0  ;;  %2010 = vmatprep.subr.bf16.mxu1 %v2920_v5  ;;  %vm2921_vm1 = vmmov 0   ;;  %v2328_v6 = vld [vmem:[#allocation9 + $0x8] sm:$0xff]   ;;  %2038 = vmatprep.subr.bf16.mxu0 %v2920_v5  ;;  %v1925_v23 = vld [vmem:[#allocation6] ss:$0 sm:$0xff]  ;;  %v2329_v31 = vld [vmem:[#allocation12] sm:$0xff]  }
 0x1b5   : > { %749 = vadd.xlane.f32.xlu0 %v748_v1  ;;  %716 = vadd.xlane.f32.xlu1 %v748_v1  ;;  %v1926_v27 = vld [vmem:[#allocation8] ss:$0 sm:$0xff]  ;;  %v1927_v37 = vld [vmem:[#allocation11] ss:$0 sm:$0xff]  ;;  %v1931_v45 = vld [vmem:[#allocation14] ss:$0 sm:$0xff] }
 0x1b6   : > { %v753_v3 = vsel %vm714_vm0, %v752_v2, 0.0  ;;  %2014 = vmatprep.mubr.msk.bf16.mxu1 %vm2921_vm1, %v2920_v5  ;;  %2011 = vmatpush3.bf16.msra.mxu1 %v2327_v4  ;;  %v2330_v34 = vld [vmem:[#allocation12 + $0x8] sm:$0xff]   ;;  %s2922_s26 = smov 120   ;;  %vm901_vm2 = vcmask 64512   ;;  %s2923_s16 = smov 112   ;;  %vm966_vm3 = vcmask 1043456  }
 0x1b7   : > { %2012 = vmatprep.subr.bf16.mxu1 %v2920_v5  ;;  %2040 = vmatprep.mubr.msk.bf16.mxu0 %vm2921_vm1, %v2920_v5  ;;  %s2924_s17 = smov 104   ;;  %s2925_s25 = smov 88   ;;  %vm1011_vm4 = vcmask 60416   ;;  %vm1131_vm5 = vcmask 126016   ;;  %vm1250_vm6 = vcmask 191616   ;;  %vm1369_vm7 = vcmask 257216  }
 0x1b8   : > { %s2926_s1 = smov 80   ;;  %s2927_s30 = smov 96  }
 0x1b9   : > { %754 = vadd.xlane.f32.xlu0 %v753_v3  ;;  %722 = vadd.xlane.f32.xlu1 %v753_v3  ;;  %s2928_s2 = smov 72   ;;  %s2929_s18 = smov 8  }
 0x1ba   : > { %2013 = vmatpush3.bf16.msra.mxu1 %v2328_v6  ;;  %s2930_s21 = smov 16   ;;  %s2931_s15 = smov 24  }
 0x1bb   : > { %2018 = vmatprep.subr.bf16.mxu1 %v2920_v5  ;;  %s3691_s24 = sld [smem:[#allocation40_spill]]  ;;  %p3693_p0 = scmp.ne.s32.totalorder %s3682_s0, 0 }
 0x242   : > { %v750_v7 = vpop.xlane.xlu0 %749  ;;  %v717_v8 = vpop.xlane.xlu1 %716 }
 0x243   : > { %v751_v9 = vmul.f32 0.03125, %v750_v7  ;;  %v719_v10 = vmul.f32 0.03125, %v717_v8 }
 0x245   : > { %v725_v11 = vmul.f32 %v719_v10, %v719_v10  ;;  %v757_v14 = vmul.f32 %v751_v9, %v751_v9  ;;  %v759_v21 = vsub.f32 %v3465_v0, %v751_v9  ;;  %v727_v25 = vsub.f32 %v3465_v0, %v719_v10 }
 0x246   : > { %v755_v12 = vpop.xlane.xlu0 %754  ;;  %v723_v13 = vpop.xlane.xlu1 %722 }
 0x247   : > { %v756_v15 = vmul.f32 0.03125, %v755_v12  ;;  %v724_v16 = vmul.f32 0.03125, %v723_v13 }
 0x249   : > { %v758_v17 = vsub.f32 %v756_v15, %v757_v14  ;;  %v726_v18 = vsub.f32 %v724_v16, %v725_v11 }
 0x24b   : > { %v760_v19 = vadd.f32 1e-05, %v758_v17  ;;  %v728_v20 = vadd.f32 1e-05, %v726_v18 }
 0x24d   : > { %2343 = vrsqrt.f32 %v760_v19 }
 0x24e   : > { %2345 = vrsqrt.f32 %v728_v20 }
 0x257   : > { %v2344_v22 = vpop.eup %2343 }
 0x258   : > { %v2346_v24 = vpop.eup %2345  ;;  %v762_v26 = vmul.f32 %v2344_v22, %v759_v21 }
 0x259   : > { %v730_v28 = vmul.f32 %v2346_v24, %v727_v25 }
 0x25a   : > { %v763_v29 = vmul.f32 %v1925_v23, %v762_v26 }
 0x25b   : > { %v738_v32 = vmul.f32 %v1925_v23, %v730_v28 }
 0x25c   : > { %v764_v30 = vadd.f32 %v1926_v27, %v763_v29 }
 0x25d   : > { %v746_v35 = vadd.f32 %v1926_v27, %v738_v32 }
 0x25e   : > { %v765_v33 = vpack.c.bf16 %v764_v30, %v764_v30 }
 0x25f   : > { %v747_v36 = vpack.c.bf16 %v746_v35, %v746_v35 }
 0x260   : > { %2015 = vmatmul.mubr.msk.bf16.vlgmr.msra.gmra.mrb[0].mxu1 %vm714_vm0, %v765_v33 }
 0x261   : > { %2019 = vmatpush3.bf16.msra.mxu1 %v2329_v31  ;;  %2022 = vmatprep.mubr.msk.bf16.mxu1 %vm2921_vm1, %v2920_v5 }
 0x262   : > { %2020 = vmatprep.subr.bf16.mxu1 %v2920_v5 }
 0x265   : > { %2021 = vmatpush3.bf16.msra.mxu1 %v2330_v34 }
 0x266   : > { %2026 = vmatprep.subr.bf16.mxu1 %v2920_v5 }
 0x268   : > { %2023 = vmatmul.mubr.msk.bf16.vlgmr.msra.gmra.mrb[4].mxu1 %vm714_vm0, %v747_v36 }
 0x269   : > { %2028 = vmatprep.mubr.msk.bf16.mxu1 %vm2921_vm1, %v2920_v5 }
 0x333   : > { %v826_v38 = vpop.f32.mrb[0].mxu1 }
 0x334   : > { %v827_v39 = vadd.f32 %v1927_v37, %v826_v38  ;;  %v2016_v40 = vpop.f32.mrb[1].mxu1 }
 0x335   : > { %v829_v41 = vpop.f32.mrb[2].mxu1 }
 0x336   : > { %v832_v42 = vmul.f32 0.35355338, %v827_v39  ;;  %v2017_v43 = vpop.f32.mrb[3].mxu1 }
 0x338   : > { %v833_v44 = vpack.c.bf16 %v832_v42, %v832_v42 }
 0x33a   : > { %1014 = vrot.lane.b32.xlu1 %v833_v44, %s2922_s26 }
 0x33b   : > { %v894_v46 = vpop.f32.mrb[4].mxu1 }
 0x33c   : > { %v895_v47 = vadd.f32 %v1931_v45, %v894_v46  ;;  %v2024_v48 = vpop.f32.mrb[5].mxu1 }
 0x33d   : > { %v897_v49 = vpop.f32.mrb[6].mxu1 }
 0x33e   : > { %v3490_v50 = vpack.c.bf16 %v895_v47, %v895_v47  ;;  %v2025_v51 = vpop.f32.mrb[7].mxu1 }
 0x340   : > { %1135 = vrot.lane.b32.xlu1 %v3490_v50, %s2923_s16  ;;  %1016 = vrot.lane.b32.xlu0 %v3490_v50, %s2922_s26  ;;  %v906_v52 = vsel %vm901_vm2, %v3490_v50, 0  ;;  %s1967_s26 = sshll.u32 %s3691_s24, 7 }
 0x341   : > { %2027 = vmatpush3.bf16.xpose.msra.mxu1 %v906_v52 }
 0x342   : > { %2032 = vmatprep.subr.bf16.mxu1 %v2920_v5 }
 0x344   : > { %1133 = vrot.lane.b32.xlu1 %v833_v44, %s2923_s16  ;;  %1254 = vrot.lane.b32.xlu0 %v3490_v50, %s2924_s17  ;;  %s708_s16 = scalar_lea.vmem [#allocation27], %s1909_s29  ;;  %s1660_s29 = scalar_lea.sflag [#allocation5], %s3427_s3 }
 0x348   : > { %1252 = vrot.lane.b32.xlu1 %v833_v44, %s2924_s17  ;;  %2029 = vmatmul.mubr.msk.bf16.vlgmr.msra.gmra.mrb[8].mxu1 %vm901_vm2, %v833_v44  ;;  %s1674_s17 = sshll.u32 %s708_s16, 4  ;;  %s3580_s17 = int_to_ptr.vmem [resolvable:$true] %s1674_s17 }
 0x349   : > { %2034 = vmatprep.mubr.msk.bf16.mxu1 %vm2921_vm1, %v2920_v5 }
 0x3ac   : > { %v1015_v55 = vpop.permute.xlu1 %1014 }
 0x3b2   : > { %v1017_v53 = vpop.permute.xlu0 %1016  ;;  %v1136_v56 = vpop.permute.xlu1 %1135 }
 0x3b3   : > { %v1022_v54 = vsel %vm901_vm2, %v1017_v53, 0  ;;  %v1141_v57 = vsel %vm901_vm2, %v1136_v56, 0 }
 0x3b4   : > { %2039 = vmatpush3.bf16.xpose.msra.mxu0 %v1022_v54 }
 0x3b5   : > { %2050 = vmatprep.subr.bf16.mxu0 %v2920_v5 }
 0x3b6   : > { %v1255_v58 = vpop.permute.xlu0 %1254  ;;  %v1134_v59 = vpop.permute.xlu1 %1133 }
 0x3b7   : > { %v1260_v60 = vsel %vm901_vm2, %v1255_v58, 0 }
 0x3ba   : > { %v1253_v61 = vpop.permute.xlu1 %1252 }
 0x3bb   : > { %2041 = vmatmul.mubr.msk.bf16.vlgmr.msra.gmra.mrb[0].mxu0 %vm901_vm2, %v1015_v55 }
 0x3bc   : > { %2051 = vmatpush3.bf16.xpose.msra.mxu0 %v1141_v57  ;;  %2052 = vmatprep.mubr.msk.bf16.mxu0 %vm2921_vm1, %v2920_v5 }
 0x3bd   : > { %2062 = vmatprep.subr.bf16.mxu0 %v2920_v5 }
 0x3c3   : > { %2053 = vmatmul.mubr.msk.bf16.vlgmr.msra.gmra.mrb[4].mxu0 %vm901_vm2, %v1134_v59 }
 0x3c4   : > { %2063 = vmatpush3.bf16.xpose.msra.mxu0 %v1260_v60  ;;  %2064 = vmatprep.mubr.msk.bf16.mxu0 %vm2921_vm1, %v2920_v5 }
 0x3c5   : > { %2074 = vmatprep.subr.bf16.mxu0 %v2920_v5 }
 0x3cb   : > { %2065 = vmatmul.mubr.msk.bf16.vlgmr.msra.gmra.mrb[8].mxu0 %vm901_vm2, %v1253_v61 }
 0x3cc   : > { %2078 = vmatprep.mubr.msk.bf16.mxu0 %vm2921_vm1, %v2920_v5 }
 0x41b   : > { %v942_v62 = vpop.f32.mrb[8].mxu1 }
 0x41c   : > { %v2030_v63 = vpop.f32.mrb[9].mxu1  ;;  %v948_v1 = vsel %vm901_vm2, %v942_v62, -inf }
 0x41d   : > { %949 = vmax.xlane.f32.xlu0 %v948_v1  ;;  %v945_v2 = vpop.f32.mrb[10].mxu1 }
 0x41e   : > { %v2031_v3 = vpop.f32.mrb[11].mxu1 }
 0x48e   : > { %v1058_v4 = vpop.f32.mrb[0].mxu0 }
 0x48f   : > { %v2042_v6 = vpop.f32.mrb[1].mxu0  ;;  %v1064_v7 = vsel %vm901_vm2, %v1058_v4, -inf }
 0x490   : > { %1065 = vmax.xlane.f32.xlu1 %v1064_v7  ;;  %v1061_v8 = vpop.f32.mrb[2].mxu0 }
 0x491   : > { %v2043_v9 = vpop.f32.mrb[3].mxu0 }
 0x496   : > { %v1177_v10 = vpop.f32.mrb[4].mxu0 }
 0x497   : > { %v2054_v11 = vpop.f32.mrb[5].mxu0  ;;  %v1183_v12 = vsel %vm901_vm2, %v1177_v10, -inf }
 0x498   : > { %1184 = vmax.xlane.f32.xlu0 %v1183_v12  ;;  %v1180_v13 = vpop.f32.mrb[6].mxu0 }
 0x499   : > { %v2055_v14 = vpop.f32.mrb[7].mxu0 }
 0x49e   : > { %v1296_v15 = vpop.f32.mrb[8].mxu0 }
 0x49f   : > { %v2066_v16 = vpop.f32.mrb[9].mxu0  ;;  %v1302_v17 = vsel %vm901_vm2, %v1296_v15, -inf }
 0x4a0   : > { %1303 = vmax.xlane.f32.xlu0 %v1302_v17  ;;  %v1299_v18 = vpop.f32.mrb[10].mxu0  ;;  %v2331_v17 = vld [vmem:[#allocation15] sm:$0xff]  }
 0x4a1   : > { %v2067_v19 = vpop.f32.mrb[11].mxu0  ;;  %2075 = vmatpush3.bf16.msra.mxu0 %v2331_v17  ;;  %v2332_v18 = vld [vmem:[#allocation15 + $0x8] sm:$0xff]  }
 0x4a2   : > { %2076 = vmatprep.subr.bf16.mxu0 %v2920_v5 }
 0x4a5   : > { %2077 = vmatpush3.bf16.msra.mxu0 %v2332_v18 }
 0x4a6   : > { %2090 = vmatprep.subr.bf16.mxu0 %v2920_v5 }
 0x4aa   : > { %v950_v20 = vpop.xlane.xlu0 %949 }
 0x4ab   : > { %v951_v21 = vsub.f32 %v942_v62, %v950_v20 }
 0x4ad   : > { %v952_v22 = vmul.f32 1.442695, %v951_v21 }
 0x4af   : > { %2347 = vpow2.f32 %v952_v22 }
 0x4b9   : > { %v2348_v23 = vpop.eup %2347 }
 0x4ba   : > { %v954_v24 = vsel %vm901_vm2, %v2348_v23, 0.0 }
 0x4bb   : > { %955 = vadd.xlane.f32.xlu0 %v954_v24 }
 0x51d   : > { %v1066_v25 = vpop.xlane.xlu1 %1065 }
 0x51e   : > { %v1067_v26 = vsub.f32 %v1058_v4, %v1066_v25 }
 0x520   : > { %v1068_v27 = vmul.f32 1.442695, %v1067_v26 }
 0x522   : > { %2349 = vpow2.f32 %v1068_v27 }
 0x525   : > { %v1185_v28 = vpop.xlane.xlu0 %1184 }
 0x526   : > { %v1186_v29 = vsub.f32 %v1177_v10, %v1185_v28  ;;  %v1946_v28 = vld [vmem:[#allocation17] ss:$0 sm:$0xff] }
 0x528   : > { %v1187_v30 = vmul.f32 1.442695, %v1186_v29 }
 0x52a   : > { %2351 = vpow2.f32 %v1187_v30 }
 0x52c   : > { %v2350_v31 = vpop.eup %2349 }
 0x52d   : > { %v1070_v32 = vsel %vm901_vm2, %v2350_v31, 0.0  ;;  %v1304_v35 = vpop.xlane.xlu0 %1303 }
 0x52e   : > { %1071 = vadd.xlane.f32.xlu1 %v1070_v32  ;;  %v1305_v36 = vsub.f32 %v1296_v15, %v1304_v35 }
 0x530   : > { %v1306_v37 = vmul.f32 1.442695, %v1305_v36 }
 0x532   : > { %2353 = vpow2.f32 %v1306_v37 }
 0x534   : > { %v2352_v33 = vpop.eup %2351 }
 0x535   : > { %v1189_v34 = vsel %vm901_vm2, %v2352_v33, 0.0 }
 0x536   : > { %1190 = vadd.xlane.f32.xlu0 %v1189_v34 }
 0x53c   : > { %v2354_v38 = vpop.eup %2353 }
 0x53d   : > { %v1308_v39 = vsel %vm901_vm2, %v2354_v38, 0.0 }
 0x53f   : > { %1076 = vrot.lane.b32.xlu1 %v3490_v50, %s2925_s25 }
 0x543   : > { %1195 = vrot.lane.b32.xlu1 %v3490_v50, %s2926_s1 }
 0x548   : > { %v956_v40 = vpop.xlane.xlu0 %955 }
 0x549   : > { %2355 = vrcp.f32 %v956_v40 }
 0x54c   : > { %961 = vrot.lane.b32.xlu0 %v3490_v50, %s2927_s30  ;;  %s3692_s30 = sld [smem:[#allocation47_spill]] }
 0x553   : > { %v2356_v42 = vpop.eup %2355 }
 0x554   : > { %v958_v44 = vmul.f32 %v2356_v42, %v2348_v23 }
 0x556   : > { %v959_v48 = vpack.c.bf16 %v958_v44, %v958_v44 }
 0x567   : > { %1309 = vadd.xlane.f32.xlu1 %v1308_v39  ;;  %v2334_v39 = vld [vmem:[#allocation21 + $0x8] sm:$0xff]  }
 0x578   : > { %1314 = vrot.lane.b32.xlu1 %v3490_v50, %s2928_s2  ;;  %s3578_s2 = scalar_lea.hbm %s3692_s30, %s1967_s26 }
 0x5bb   : > { %v1072_v41 = vpop.xlane.xlu1 %1071 }
 0x5bc   : > { %2357 = vrcp.f32 %v1072_v41 }
 0x5bf   : > { %v1077_v47 = vpop.permute.xlu1 %1076 }
 0x5c0   : > { %v1082_v50 = vsel %vm966_vm3, %v1077_v47, 0 }
 0x5c3   : > { %v1191_v43 = vpop.xlane.xlu0 %1190  ;;  %v1196_v52 = vpop.permute.xlu1 %1195 }
 0x5c4   : > { %2359 = vrcp.f32 %v1191_v43  ;;  %v1201_v55 = vsel %vm966_vm3, %v1196_v52, 0 }
 0x5c6   : > { %v2358_v49 = vpop.eup %2357 }
 0x5c7   : > { %v962_v45 = vpop.permute.xlu0 %961  ;;  %v1074_v51 = vmul.f32 %v2358_v49, %v2350_v31 }
 0x5c8   : > { %v968_v46 = vsel %vm966_vm3, %v962_v45, 0 }
 0x5c9   : > { %2033 = vmatpush3.bf16.msra.mxu1 %v968_v46  ;;  %v1075_v53 = vpack.c.bf16 %v1074_v51, %v1074_v51 }
 0x5ca   : > { %2044 = vmatprep.subr.bf16.mxu1 %v2920_v5 }
 0x5cc   : > { %2035 = vmatmul.mubr.msk.bf16.vlgmr.msra.gmra.mrb[12].mxu1 %vm901_vm2, %v959_v48  ;;  %v1950_v48 = vld [vmem:[#allocation18] ss:$0 sm:$0xff] }
 0x5cd   : > { %2045 = vmatpush3.bf16.msra.mxu1 %v1082_v50  ;;  %2046 = vmatprep.mubr.msk.bf16.mxu1 %vm2921_vm1, %v2920_v5  ;;  %v1951_v50 = vld [vmem:[#allocation20] ss:$0 sm:$0xff] }
 0x5ce   : > { %2056 = vmatprep.subr.bf16.mxu1 %v2920_v5  ;;  %v2360_v54 = vpop.eup %2359 }
 0x5cf   : > { %v1193_v56 = vmul.f32 %v2360_v54, %v2352_v33  ;;  %v2335_v54 = vld [vmem:[#allocation24] sm:$0xff]  }
 0x5d1   : > { %v1194_v57 = vpack.c.bf16 %v1193_v56, %v1193_v56  ;;  %v2337_v56 = vld [vmem:[#allocation24 + $0x10] sm:$0xff]  }
 0x5d4   : > { %2047 = vmatmul.mubr.msk.bf16.vlgmr.msra.gmra.mrb[16].mxu1 %vm901_vm2, %v1075_v53 }
 0x5d5   : > { %2057 = vmatpush3.bf16.msra.mxu1 %v1201_v55  ;;  %2058 = vmatprep.mubr.msk.bf16.mxu1 %vm2921_vm1, %v2920_v5  ;;  %v2336_v55 = vld [vmem:[#allocation24 + $0x8] sm:$0xff]  }
 0x5d6   : > { %2068 = vmatprep.subr.bf16.mxu1 %v2920_v5 }
 0x5dc   : > { %2059 = vmatmul.mubr.msk.bf16.vlgmr.msra.gmra.mrb[20].mxu1 %vm901_vm2, %v1194_v57  ;;  %v2338_v57 = vld [vmem:[#allocation24 + $0x18] sm:$0xff]  }
 0x5dd   : > { %2070 = vmatprep.mubr.msk.bf16.mxu1 %vm2921_vm1, %v2920_v5 }
 0x5f4   : > { %v1310_v58 = vpop.xlane.xlu1 %1309 }
 0x5f5   : > { %2361 = vrcp.f32 %v1310_v58  ;;  %v2339_v58 = vld [vmem:[#allocation24 + $0x20] sm:$0xff]  }
 0x5f8   : > { %v1315_v59 = vpop.permute.xlu1 %1314 }
 0x5f9   : > { %v1320_v60 = vsel %vm966_vm3, %v1315_v59, 0  ;;  %v2340_v59 = vld [vmem:[#allocation24 + $0x28] sm:$0xff]  }
 0x5fa   : > { %2069 = vmatpush3.bf16.msra.mxu1 %v1320_v60  ;;  %v2341_v60 = vld [vmem:[#allocation24 + $0x30] sm:$0xff]  }
 0x5fb   : > { %2082 = vmatprep.subr.bf16.mxu1 %v2920_v5 }
 0x5ff   : > { %v2362_v61 = vpop.eup %2361 }
 0x600   : > { %v1312_v62 = vmul.f32 %v2362_v61, %v2354_v38  ;;  %v2333_v38 = vld [vmem:[#allocation21] sm:$0xff]   ;;  %v2342_v61 = vld [vmem:[#allocation24 + $0x38] sm:$0xff]  }
 0x602   : > { %v1313_v63 = vpack.c.bf16 %v1312_v62, %v1312_v62  ;;  %v1952_v62 = vld [vmem:[#allocation23] ss:$0 sm:$0xff] }
 0x604   : > { %2071 = vmatmul.mubr.msk.bf16.vlgmr.msra.gmra.mrb[24].mxu1 %vm901_vm2, %v1313_v63 }
 0x605   : > { %2086 = vmatprep.mubr.msk.bf16.mxu1 %vm2921_vm1, %v2920_v5  ;;  %2083 = vmatpush3.bf16.msra.mxu1 %v2333_v38 }
 0x606   : > { %2084 = vmatprep.subr.bf16.mxu1 %v2920_v5 }
 0x609   : > { %2085 = vmatpush3.bf16.msra.mxu1 %v2334_v39 }
 0x69f   : > { %v1004_v1 = vpop.f32.mrb[12].mxu1 }
 0x6a0   : > { %v1010_v2 = vpack.c.bf16 %v1004_v1, %v1004_v1  ;;  %v2036_v3 = vpop.f32.mrb[13].mxu1 }
 0x6a1   : > { %v1007_v4 = vpop.f32.mrb[14].mxu1 }
 0x6a2   : > { %1012 = vst.msk [vmem:[#allocation2] sm:$0xf] %vm1011_vm4, %v1010_v2  ;;  %v2037_v6 = vpop.f32.mrb[15].mxu1 }
 0x6a7   : > { %v1118_v7 = vpop.f32.mrb[16].mxu1 }
 0x6a8   : > { %v1970_v8 = vpack.c.bf16 %v1118_v7, %v1118_v7  ;;  %v2048_v9 = vpop.f32.mrb[17].mxu1 }
 0x6a9   : > { %v1121_v10 = vpop.f32.mrb[18].mxu1 }
 0x6aa   : > { %1128 = vrot.lane.b32.xlu0 %v1970_v8, %s2929_s18  ;;  %v2049_v11 = vpop.f32.mrb[19].mxu1  ;;  %s2791_s18 = scalar_lea.vmem %s3580_s17, 128 }
 0x6ab   : > { %p2792_p11 = scmp.ne.s32.totalorder %s3580_s17, %s2791_s18 }
 0x6ad   : > { %p2793_p5 = pnand %p2792_p11, %p3693_p0 }
 0x6af   : > { %v1237_v12 = vpop.f32.mrb[20].mxu1  ;;  %p2794_p7 = pneg %p2793_p5 }
 0x6b0   : > { %v1971_v13 = vpack.c.bf16 %v1237_v12, %v1237_v12  ;;  %v2060_v14 = vpop.f32.mrb[21].mxu1  ;;  %v1957_v12 = vld [vmem:[#allocation26] ss:$0 sm:$0xff] }
 0x6b1   : > { %v1240_v15 = vpop.f32.mrb[22].mxu1 }
 0x6b2   : > { %1247 = vrot.lane.b32.xlu1 %v1971_v13, %s2930_s21  ;;  %v2061_v16 = vpop.f32.mrb[23].mxu1  ;;  %s2932_s21 = smov [#allocation27]  }
 0x6d7   : > { %v1356_v19 = vpop.f32.mrb[24].mxu1 }
 0x6d8   : > { %v1972_v20 = vpack.c.bf16 %v1356_v19, %v1356_v19  ;;  %v2072_v21 = vpop.f32.mrb[25].mxu1 }
 0x6d9   : > { %v1359_v22 = vpop.f32.mrb[26].mxu1 }
 0x6da   : > { %1366 = vrot.lane.b32.xlu0 %v1972_v20, %s2931_s15  ;;  %v2073_v23 = vpop.f32.mrb[27].mxu1  ;;  %s2795_s15 = sshll.u32 %s2932_s21, 4  ;;  %s2796_s15 = int_to_ptr.vmem [resolvable:$false] %s2795_s15 }
 0x6db   : > { %s2797_s24 = scalar_lea.vmem %s2796_s15, 256  ;;  %p2798_p10 = scmp.lt.s32.totalorder %s3580_s17, %s2796_s15 }
 0x6dc   : > { %p2799_p13 = scmp.lt.s32.totalorder %s2797_s24, %s2791_s18 }
 0x6de   : > { %p2800_p2 = por %p2799_p13, %p2798_p10 }
 0x6e0   : > { %p2801_p8 = pnand %p2800_p2, %p2794_p7 }
 0x71c   : > { %v1129_v24 = vpop.permute.xlu0 %1128 }
 0x71d   : > { %1132 = vst.msk [vmem:[#allocation2] sm:$0xf] %vm1131_vm5, %v1129_v24 }
 0x724   : > { %v1248_v25 = vpop.permute.xlu1 %1247 }
 0x725   : > { %1251 = vst.msk [vmem:[#allocation2] sm:$0xf] %vm1250_vm6, %v1248_v25 }
 0x74c   : > { %v1367_v26 = vpop.permute.xlu0 %1366 }
 0x74d   : > { %1370 = vst.msk [vmem:[#allocation2] sm:$0xf] %vm1369_vm7, %v1367_v26 }
 0x754   : > { %v1371_v27 = vld [vmem:[#allocation2] sm:$0xf] }
 0x755   : > { %2079 = vmatmul.mubr.msk.bf16.vlgmr.msra.gmra.mrb[12].mxu0 %vm714_vm0, %v1371_v27 }
 0x756   : > { %2106 = vmatprep.mubr.msk.bf16.mxu0 %vm2921_vm1, %v2920_v5  ;;  %2091 = vmatpush3.bf16.msra.mxu0 %v2335_v54 }
 0x757   : > { %2092 = vmatprep.subr.bf16.mxu0 %v2920_v5 }
 0x75a   : > { %2093 = vmatpush3.bf16.msra.mxu0 %v2336_v55 }
 0x75b   : > { %2094 = vmatprep.subr.bf16.mxu0 %v2920_v5 }
 0x75e   : > { %2095 = vmatpush3.bf16.msra.mxu0 %v2337_v56 }
 0x75f   : > { %2096 = vmatprep.subr.bf16.mxu0 %v2920_v5 }
 0x762   : > { %2097 = vmatpush3.bf16.msra.mxu0 %v2338_v57 }
 0x763   : > { %2098 = vmatprep.subr.bf16.mxu0 %v2920_v5 }
 0x766   : > { %2099 = vmatpush3.bf16.msra.mxu0 %v2339_v58 }
 0x767   : > { %2100 = vmatprep.subr.bf16.mxu0 %v2920_v5 }
 0x76a   : > { %2101 = vmatpush3.bf16.msra.mxu0 %v2340_v59 }
 0x76b   : > { %2102 = vmatprep.subr.bf16.mxu0 %v2920_v5 }
 0x76e   : > { %2103 = vmatpush3.bf16.msra.mxu0 %v2341_v60 }
 0x76f   : > { %2104 = vmatprep.subr.bf16.mxu0 %v2920_v5 }
 0x772   : > { %2105 = vmatpush3.bf16.msra.mxu0 %v2342_v61 }
 0x828   : > { %v1432_v29 = vpop.f32.mrb[12].mxu0 }
 0x829   : > { %v1433_v30 = vadd.f32 %v1946_v28, %v1432_v29  ;;  %v2080_v31 = vpop.f32.mrb[13].mxu0 }
 0x82a   : > { %v1435_v32 = vpop.f32.mrb[14].mxu0 }
 0x82b   : > { %v3554_v33 = vadd.f32 %v1433_v30, %v3465_v0  ;;  %v2081_v34 = vpop.f32.mrb[15].mxu0 }
 0x82d   : > { %v1439_v35 = vsel %vm714_vm0, %v3554_v33, 0.0  ;;  %v1443_v36 = vmul.f32 %v3554_v33, %v3554_v33 }
 0x82e   : > { %1440 = vadd.xlane.f32.xlu1 %v1439_v35 }
 0x82f   : > { %v1444_v37 = vsel %vm714_vm0, %v1443_v36, 0.0 }
 0x830   : > { %1445 = vadd.xlane.f32.xlu0 %v1444_v37 }
 0x8bb   : > { %v1441_v40 = vpop.xlane.xlu1 %1440 }
 0x8bc   : > { %v1442_v0 = vmul.f32 0.03125, %v1441_v40 }
 0x8bd   : > { %v1446_v41 = vpop.xlane.xlu0 %1445 }
 0x8be   : > { %v1448_v42 = vmul.f32 %v1442_v0, %v1442_v0  ;;  %v1447_v43 = vmul.f32 0.03125, %v1446_v41  ;;  %v1450_v46 = vsub.f32 %v3554_v33, %v1442_v0 }
 0x8c0   : > { %v1449_v44 = vsub.f32 %v1447_v43, %v1448_v42 }
 0x8c2   : > { %v1451_v45 = vadd.f32 1e-05, %v1449_v44 }
 0x8c4   : > { %2363 = vrsqrt.f32 %v1451_v45 }
 0x8ce   : > { %v2364_v47 = vpop.eup %2363 }
 0x8cf   : > { %v1453_v49 = vmul.f32 %v2364_v47, %v1450_v46 }
 0x8d1   : > { %v1461_v51 = vmul.f32 %v1950_v48, %v1453_v49 }
 0x8d3   : > { %v1469_v52 = vadd.f32 %v1951_v50, %v1461_v51 }
 0x8d5   : > { %v1470_v53 = vpack.c.bf16 %v1469_v52, %v1469_v52 }
 0x8d7   : > { %2087 = vmatmul.mubr.msk.bf16.vlgmr.msra.gmra.mrb[28].mxu1 %vm714_vm0, %v1470_v53 }
 0x9aa   : > { %v1531_v63 = vpop.f32.mrb[28].mxu1 }
 0x9ab   : > { %v1532_v1 = vadd.f32 %v1952_v62, %v1531_v63  ;;  %v2088_v2 = vpop.f32.mrb[29].mxu1 }
 0x9ac   : > { %v1534_v3 = vpop.f32.mrb[30].mxu1 }
 0x9ad   : > { %v1956_v4 = vmul.f32 -1.702, %v1532_v1  ;;  %v2089_v6 = vpop.f32.mrb[31].mxu1 }
 0x9af   : > { %v1539_v7 = vmul.f32 1.442695, %v1956_v4 }
 0x9b1   : > { %2365 = vpow2.f32 %v1539_v7 }
 0x9bb   : > { %v2366_v8 = vpop.eup %2365 }
 0x9bc   : > { %v1541_v9 = vadd.f32 1.0, %v2366_v8 }
 0x9be   : > { %2367 = vrcp.f32 %v1541_v9 }
 0x9c8   : > { %v2368_v10 = vpop.eup %2367 }
 0x9c9   : > { %v1544_v11 = vmul.f32 %v2368_v10, %v1532_v1 }
 0x9cb   : > { %v1545_v5 = vpack.c.bf16 %v1544_v11, %v1544_v11 }
 0x9cd   : > { %2107 = vmatmul.mubr.bf16.vlgmr.msra.gmra.mrb[16].mxu0 %v1545_v5 }
 0xaa0   : > { %v1651_v13 = vpop.f32.mrb[16].mxu0 }
 0xaa1   : > { %v1652_v14 = vadd.f32 %v1957_v12, %v1651_v13  ;;  %v2108_v15 = vpop.f32.mrb[17].mxu0 }
 0xaa2   : > { %v1654_v16 = vpop.f32.mrb[18].mxu0 }
 0xaa3   : > { %v1657_v17 = vadd.f32 %v1652_v14, %v3554_v33  ;;  %v2109_v18 = vpop.f32.mrb[19].mxu0 }
 0xaa5   : > { %1658 = vst.msk [vmem:[%s708_s16] sm:$0xff] %vm714_vm0, %v1657_v17 }
 0xaa6   : > { %2804 = shalt.err (!%p2801_p8)
}
 0xaa7   : > { %s2805_s3 = scalar_lea.hbm %s3578_s2, 128  ;;  %s2809_s25 = scalar_lea.hbm %s3692_s30, 256 }
 0xaa8   : > { %p2806_p9 = scmp.ne.s32.totalorder %s3578_s2, %s2805_s3  ;;  %p2810_p3 = scmp.lt.u32.totalorder %s3578_s2, %s3692_s30 }
 0xaa9   : > { %p2811_p1 = scmp.lt.u32.totalorder %s2809_s25, %s2805_s3  ;;  %p2813_p11 = scmp.lt.u32.totalorder %s2805_s3, %s3578_s2 }
 0xaaa   : > { %p2807_p4 = pnand %p2806_p9, %p3693_p0 }
 0xaab   : > { %p2812_p12 = por %p2811_p1, %p2810_p3 }
 0xaac   : > { %p2808_p6 = pneg %p2807_p4 }
 0xaad   : > { %p2814_p5 = por %p2813_p11, %p2812_p12 }
 0xaaf   : > { %p2815_p7 = pnand %p2814_p5, %p2808_p6 }
 0xab1   : > { %2818 = shalt.err (!%p2815_p7)
}
 0xab2   : > { %2168 = dma.vmem_to_hbm [thread:$0]  (%p3693_p0), %s3580_s17, 128, %s3578_s2, %s1660_s29  }
 0xab3 PF: > { %s3694_s18 = sld [smem:[#allocation37_spill]]  ;;  %p3695_p10 = scmp.ne.s32.totalorder %s3683_s19, 0 }
 0xab4   : > { %p3696_p13 = scmp.ge.s32.totalorder %s2901_s23, 2 }
 0xab6   : > { %p2218_p2 = pnand %p3696_p13, %p3695_p10 }
 0xab9   : > { %s1686_s15 = sand.u32 1, %s3694_s18  }
 0xaba   : > { %s1687_s24 = scalar_lea.sflag [#allocation5], %s1686_s15 }
 0xabb   : > { %2876 = dma.done.wait (!%p2218_p2), %s1687_s24, 128  }
 0xabc   : > { %2878 = vsyncadd (!%p2218_p2), %s1687_s24, 4294967168  ;;  %s38_s23 = sadd.s32 1, %s2901_s23   ;;  %s3697_s18 = sld [smem:[#allocation38_spill]] }
 0xabd   : > { %p35_p8 = scmp.ge.s32.totalorder %s38_s23, 4   ;;  %s3698_s19 = sld [smem:[#allocation39_spill]] }
 0xabe   : > { %s3699_s0 = smov %s3704_s20  ;;  %s3700_s20 = smov %s3377_s28 }
 0xabf   : > { %s3701_s21 = smov %s2897_s22  ;;  %s3702_s22 = smov %s3699_s0 }
 0xac0   :  { %37 = sbr.rel (!%p35_p8) target bundleno = 19 (0x13), region = 182 }
 0xac7   :  { %1692 = vsyncpa [#allocation4], 1 }
 0xac8   :  { %1694 = vsyncpa [#allocation4 + $0x1], 1 }
 0xac9   :  { %1695 = vsyncpa [#allocation7], 1 }
 0xaca   :  { %1696 = vsyncpa [#allocation10], 1 }
 0xacb   :  { %1697 = vsyncpa [#allocation13], 1 }
 0xacc   :  { %1698 = vsyncpa [#allocation16], 1 }
 0xacd   :  { %1699 = vsyncpa [#allocation19], 1 }
 0xace   :  { %1700 = vsyncpa [#allocation22], 1 }
 0xacf   :  { %1701 = vsyncpa [#allocation25], 1 }
 0xad0   :  { %1702 = vsyncpa [#allocation5], 1 }
 0xad1   :  { %1704 = vsyncpa [#allocation5 + $0x1], 1 }

</bundles_post_ra>
